<compile_context>
chip_gen: v7x
topology: tpu7x:2x2x1
jax: 0.10.0
libtpu: 0.0.40
codegen_flags: <defaults>
</compile_context>

<pallas_src>
import functools

import numpy as np
import jax
import jax.numpy as jnp
from jax.experimental import pallas as pl
from jax.experimental.pallas import tpu as pltpu


def _expand_conv3x3_weight(w):
    """(Cout, Cin, 3, 3) conv weight -> (9, 4*Cin, 4*Cout) patch-space weight.

    Entry [3*di+dj, (phi,pwi,ci), (ph,pw,co)] is the contribution of input
    intra-patch position (phi,pwi), channel ci in the patch at offset
    (di-1, dj-1) to output intra-patch position (ph,pw), channel co.
    """
    w = np.asarray(w, dtype=np.float32)
    cout, cin = w.shape[0], w.shape[1]
    big = np.zeros((3, 3, 4 * cin, 4 * cout), np.float32)
    for ph in range(2):
        for pw in range(2):
            for u in range(3):
                for v in range(3):
                    di, phi = divmod(ph + u - 1, 2)
                    dj, pwi = divmod(pw + v - 1, 2)
                    kin = (phi * 2 + pwi) * cin
                    kout = (ph * 2 + pw) * cout
                    big[di + 1, dj + 1, kin:kin + cin, kout:kout + cout] = \
                        w[:, :, u, v].T
    return jnp.asarray(big.reshape(9, 4 * cin, 4 * cout))


def _downsample_kernel(xf_ref, mask_ref, w1_ref, b1_ref, w2_ref, b2_ref,
                       x1_ref, pool_ref, h1_ref, *, N2, Wqp, ext, Cout):
    # xf_ref  : (1, Next, 4*Cin)  zero-padded patch grid of x, flat-extended by ext
    # mask_ref: (N2, 1)           1 on real patch columns, 0 on the ring columns
    # w*_ref  : (9, 4*C, 4*C)     expanded 3x3 conv weights, b*_ref: (1, 4*Cout)
    # x1_ref  : (1, N2, 4*Cout)   conv2 output rows (incl. 2 junk ring cols/row)
    # pool_ref: (1, N2, Cout)     2x2 max-pooled output (same junk cols)
    # h1_ref  : (Next, 4*Cout)    VMEM scratch for the conv1 activation
    K2 = 4 * Cout
    Next = h1_ref.shape[0]
    base = ext + Wqp                      # flat offset of the first real patch row
    taps = [(di, dj) for di in range(3) for dj in range(3)]

    # --- conv1 + bias + ReLU on the real patch rows: 9 lane-dense MXU matmuls ---
    acc1 = jnp.zeros((N2, K2), jnp.float32)
    for t, (di, dj) in enumerate(taps):
        off = base + (di - 1) * Wqp + (dj - 1)
        acc1 = acc1 + jnp.dot(xf_ref[0, pl.ds(off, N2), :], w1_ref[t],
                              preferred_element_type=jnp.float32)
    # Masking the ring columns to zero IS conv2's zero padding along W.
    h1 = jnp.maximum(acc1 + b1_ref[...], 0.0) * mask_ref[...]

    # --- stage conv1 output into the flat-extended scratch buffer -------------
    # The halo rows (never produced by the matmuls) provide conv2's zero
    # padding along H; zero just those rows every step (megacore-safe, cheap).
    h1_ref[pl.ds(0, base), :] = jnp.zeros((base, K2), h1_ref.dtype)
    h1_ref[pl.ds(base + N2, Next - base - N2), :] = jnp.zeros(
        (Next - base - N2, K2), h1_ref.dtype)
    h1_ref[pl.ds(base, N2), :] = h1

    # --- conv2 + bias + ReLU over the same rows (9 MXU matmuls) ---------------
    acc2 = jnp.zeros((N2, K2), jnp.float32)
    for t, (di, dj) in enumerate(taps):
        off = base + (di - 1) * Wqp + (dj - 1)
        acc2 = acc2 + jnp.dot(h1_ref[pl.ds(off, N2), :], w2_ref[t],
                              preferred_element_type=jnp.float32)
    y2 = jnp.maximum(acc2 + b2_ref[...], 0.0)
    x1_ref[0] = y2

    # --- fused 2x2/stride-2 MaxPool: max over the 4 intra-patch lane groups ---
    pool = jnp.maximum(
        jnp.maximum(y2[:, 0 * Cout:1 * Cout], y2[:, 1 * Cout:2 * Cout]),
        jnp.maximum(y2[:, 2 * Cout:3 * Cout], y2[:, 3 * Cout:4 * Cout]))
    pool_ref[0] = pool


def down_sample(x, params):
    """x: (B, Cin, H, W) NCHW -> (x1 (B,Cout,H,W), maxpool2x2(x1) (B,Cout,H/2,W/2))."""
    B, Cin, H, W = x.shape
    Cout = params["w1"].shape[0]
    assert H % 2 == 0 and W % 2 == 0, "even spatial dims assumed"
    Hq, Wq = H // 2, W // 2            # patch grid
    Hqp, Wqp = Hq + 2, Wq + 2          # patch grid zero-padded by 1
    Pp = Hqp * Wqp                     # padded patch count
    ext = 1                            # flat extension so all tap slices stay in range
    Next = Pp + 2 * ext
    N2 = Hq * Wqp                      # conv output rows (real rows, incl. ring cols)
    K1, K2 = 4 * Cin, 4 * Cout

    # ---- glue: NCHW -> zero-padded, flat-extended patch layout ----
    xp = x.reshape(B, Cin, Hq, 2, Wq, 2).transpose(0, 2, 4, 3, 5, 1)
    xp = xp.reshape(B, Hq, Wq, K1).astype(jnp.float32)
    xp = jnp.pad(xp, ((0, 0), (1, 1), (1, 1), (0, 0)))
    xf = jnp.pad(xp.reshape(B, Pp, K1), ((0, 0), (ext, ext), (0, 0)))

    w1 = _expand_conv3x3_weight(params["w1"])
    w2 = _expand_conv3x3_weight(params["w2"])
    b1 = jnp.tile(params["b1"].astype(jnp.float32), 4).reshape(1, K2)
    b2 = jnp.tile(params["b2"].astype(jnp.float32), 4).reshape(1, K2)

    mask2d = np.zeros((Hq, Wqp), np.float32)
    mask2d[:, 1:Wq + 1] = 1.0
    mask = jnp.asarray(mask2d.reshape(N2, 1))

    kernel = functools.partial(_downsample_kernel, N2=N2, Wqp=Wqp, ext=ext,
                               Cout=Cout)

    x1_pad, pool_pad = pl.pallas_call(
        kernel,
        out_shape=(jax.ShapeDtypeStruct((B, N2, K2), jnp.float32),
                   jax.ShapeDtypeStruct((B, N2, Cout), jnp.float32)),
        grid=(B,),
        in_specs=[
            pl.BlockSpec((1, Next, K1), lambda b: (b, 0, 0)),
            pl.BlockSpec((N2, 1), lambda b: (0, 0)),
            pl.BlockSpec((9, K1, K2), lambda b: (0, 0, 0)),
            pl.BlockSpec((1, K2), lambda b: (0, 0)),
            pl.BlockSpec((9, K2, K2), lambda b: (0, 0, 0)),
            pl.BlockSpec((1, K2), lambda b: (0, 0)),
        ],
        out_specs=(
            pl.BlockSpec((1, N2, K2), lambda b: (b, 0, 0)),
            pl.BlockSpec((1, N2, Cout), lambda b: (b, 0, 0)),
        ),
        scratch_shapes=[pltpu.VMEM((Next, K2), jnp.float32)],
        compiler_params=pltpu.CompilerParams(
            dimension_semantics=("parallel",),
            vmem_limit_bytes=32 * 1024 * 1024),
    )(xf, mask, w1, b1, w2, b2)

    # ---- glue: padded patch layout -> NCHW outputs (drop the 2 junk cols/row) ----
    x1 = x1_pad.reshape(B, Hq, Wqp, 2, 2, Cout)[:, :, 1:Wq + 1]
    x1 = x1.transpose(0, 5, 1, 3, 2, 4).reshape(B, Cout, H, W)
    pool = pool_pad.reshape(B, Hq, Wqp, Cout)[:, :, 1:Wq + 1]
    pool = pool.transpose(0, 3, 1, 2)
    return x1, pool


def _reference_downsample(x, params):
    """Pure-JAX reference matching the PyTorch DownSample module."""
    dn = ("NCHW", "OIHW", "NCHW")

    def conv_relu(h, w, b):
        h = jax.lax.conv_general_dilated(h, w, (1, 1), ((1, 1), (1, 1)),
                                         dimension_numbers=dn)
        return jnp.maximum(h + b.reshape(1, -1, 1, 1), 0.0)

    x1 = conv_relu(conv_relu(x, params["w1"], params["b1"]),
                   params["w2"], params["b2"])
    pool = jax.lax.reduce_window(x1, -jnp.inf, jax.lax.max,
                                 (1, 1, 2, 2), (1, 1, 2, 2), "VALID")
    return x1, pool


if __name__ == "__main__":
    B, Cin, Cout, H, W = 2, 4, 8, 16, 16

    key = jax.random.PRNGKey(0)
    kx, k1, k2, k3, k4 = jax.random.split(key, 5)
    x = jax.random.normal(kx, (B, Cin, H, W), jnp.float32)
    params = {
        "w1": jax.random.normal(k1, (Cout, Cin, 3, 3), jnp.float32) * 0.1,
        "b1": jax.random.normal(k2, (Cout,), jnp.float32) * 0.1,
        "w2": jax.random.normal(k3, (Cout, Cout, 3, 3), jnp.float32) * 0.1,
        "b2": jax.random.normal(k4, (Cout,), jnp.float32) * 0.1,
    }

    x1, pool = down_sample(x, params)
    x1 = jax.block_until_ready(x1)
    pool = jax.block_until_ready(pool)

    ref_x1, ref_pool = _reference_downsample(x, params)
    ref_x1 = jax.block_until_ready(ref_x1)
    ref_pool = jax.block_until_ready(ref_pool)

    np.testing.assert_allclose(np.asarray(x1), np.asarray(ref_x1),
                               rtol=1e-5, atol=1e-5)
    np.testing.assert_allclose(np.asarray(pool), np.asarray(ref_pool),
                               rtol=1e-5, atol=1e-5)
    print("KERNEL_OK")
</pallas_src>

<mosaic_0001>
module attributes {stable_mosaic.version = 11 : i64} {
  func.func @_downsample_kernel(%arg0: i32, %arg1: memref<1x102x16xf32, #tpu.memory_space<vmem>>, %arg2: memref<80x1xf32, #tpu.memory_space<vmem>>, %arg3: memref<9x16x32xf32, #tpu.memory_space<vmem>>, %arg4: memref<1x32xf32, #tpu.memory_space<vmem>>, %arg5: memref<9x32x32xf32, #tpu.memory_space<vmem>>, %arg6: memref<1x32xf32, #tpu.memory_space<vmem>>, %arg7: memref<1x80x32xf32, #tpu.memory_space<vmem>>, %arg8: memref<1x80x8xf32, #tpu.memory_space<vmem>>, %arg9: memref<102x32xf32, #tpu.memory_space<vmem>>) attributes {dimension_semantics = [#tpu.dimension_semantics<parallel>], iteration_bounds = array<i64: 2>, scalar_prefetch = 0 : i64, scratch_operands = 1 : i64, tpu.core_type = #tpu.core_type<tc>, window_params = [{transform_indices = @transform_0, window_bounds = array<i64: 1, 102, 16>}, {pipeline_mode = #tpu.pipeline_mode<synchronous>, transform_indices = @transform_1, window_bounds = array<i64: 80, 1>}, {pipeline_mode = #tpu.pipeline_mode<synchronous>, transform_indices = @transform_2, window_bounds = array<i64: 9, 16, 32>}, {pipeline_mode = #tpu.pipeline_mode<synchronous>, transform_indices = @transform_3, window_bounds = array<i64: 1, 32>}, {pipeline_mode = #tpu.pipeline_mode<synchronous>, transform_indices = @transform_4, window_bounds = array<i64: 9, 32, 32>}, {pipeline_mode = #tpu.pipeline_mode<synchronous>, transform_indices = @transform_5, window_bounds = array<i64: 1, 32>}, {transform_indices = @transform_6, window_bounds = array<i64: 1, 80, 32>}, {transform_indices = @transform_7, window_bounds = array<i64: 1, 80, 8>}]} {
    %cst = arith.constant 0.000000e+00 : f32
    %0 = vector.broadcast %cst : f32 to vector<80x32xf32>
    %c0 = arith.constant 0 : index
    %c0_0 = arith.constant 0 : index
    %c0_1 = arith.constant 0 : index
    %1 = vector.load %arg1[%c0, %c0_0, %c0_1] : memref<1x102x16xf32, #tpu.memory_space<vmem>>, vector<1x80x16xf32>
    %2 = vector.shape_cast %1 : vector<1x80x16xf32> to vector<80x16xf32>
    %c0_2 = arith.constant 0 : index
    %c0_3 = arith.constant 0 : index
    %c0_4 = arith.constant 0 : index
    %3 = vector.load %arg3[%c0_2, %c0_3, %c0_4] : memref<9x16x32xf32, #tpu.memory_space<vmem>>, vector<1x16x32xf32>
    %4 = vector.shape_cast %3 : vector<1x16x32xf32> to vector<16x32xf32>
    %cst_5 = arith.constant dense<0.000000e+00> : vector<80x32xf32>
    %5 = tpu.matmul %2, %4, %cst_5 {dimension_numbers = #tpu.dot_dimension_numbers<[1], [0], [0], [1], [0, 0, 1, 1], [], []>} : vector<80x16xf32>, vector<16x32xf32>, vector<80x32xf32> -> vector<80x32xf32>
    %6 = arith.addf %0, %5 : vector<80x32xf32>
    %c0_6 = arith.constant 0 : index
    %c1 = arith.constant 1 : index
    %c0_7 = arith.constant 0 : index
    %7 = vector.load %arg1[%c0_6, %c1, %c0_7] : memref<1x102x16xf32, #tpu.memory_space<vmem>>, vector<1x80x16xf32>
    %8 = vector.shape_cast %7 : vector<1x80x16xf32> to vector<80x16xf32>
    %c1_8 = arith.constant 1 : index
    %c0_9 = arith.constant 0 : index
    %c0_10 = arith.constant 0 : index
    %9 = vector.load %arg3[%c1_8, %c0_9, %c0_10] : memref<9x16x32xf32, #tpu.memory_space<vmem>>, vector<1x16x32xf32>
    %10 = vector.shape_cast %9 : vector<1x16x32xf32> to vector<16x32xf32>
    %cst_11 = arith.constant dense<0.000000e+00> : vector<80x32xf32>
    %11 = tpu.matmul %8, %10, %cst_11 {dimension_numbers = #tpu.dot_dimension_numbers<[1], [0], [0], [1], [0, 0, 1, 1], [], []>} : vector<80x16xf32>, vector<16x32xf32>, vector<80x32xf32> -> vector<80x32xf32>
    %12 = arith.addf %6, %11 : vector<80x32xf32>
    %c0_12 = arith.constant 0 : index
    %c2 = arith.constant 2 : index
    %c0_13 = arith.constant 0 : index
    %13 = vector.load %arg1[%c0_12, %c2, %c0_13] : memref<1x102x16xf32, #tpu.memory_space<vmem>>, vector<1x80x16xf32>
    %14 = vector.shape_cast %13 : vector<1x80x16xf32> to vector<80x16xf32>
    %c2_14 = arith.constant 2 : index
    %c0_15 = arith.constant 0 : index
    %c0_16 = arith.constant 0 : index
    %15 = vector.load %arg3[%c2_14, %c0_15, %c0_16] : memref<9x16x32xf32, #tpu.memory_space<vmem>>, vector<1x16x32xf32>
    %16 = vector.shape_cast %15 : vector<1x16x32xf32> to vector<16x32xf32>
    %cst_17 = arith.constant dense<0.000000e+00> : vector<80x32xf32>
    %17 = tpu.matmul %14, %16, %cst_17 {dimension_numbers = #tpu.dot_dimension_numbers<[1], [0], [0], [1], [0, 0, 1, 1], [], []>} : vector<80x16xf32>, vector<16x32xf32>, vector<80x32xf32> -> vector<80x32xf32>
    %18 = arith.addf %12, %17 : vector<80x32xf32>
    %c0_18 = arith.constant 0 : index
    %c10 = arith.constant 10 : index
    %c0_19 = arith.constant 0 : index
    %19 = vector.load %arg1[%c0_18, %c10, %c0_19] : memref<1x102x16xf32, #tpu.memory_space<vmem>>, vector<1x80x16xf32>
    %20 = vector.shape_cast %19 : vector<1x80x16xf32> to vector<80x16xf32>
    %c3 = arith.constant 3 : index
    %c0_20 = arith.constant 0 : index
    %c0_21 = arith.constant 0 : index
    %21 = vector.load %arg3[%c3, %c0_20, %c0_21] : memref<9x16x32xf32, #tpu.memory_space<vmem>>, vector<1x16x32xf32>
    %22 = vector.shape_cast %21 : vector<1x16x32xf32> to vector<16x32xf32>
    %cst_22 = arith.constant dense<0.000000e+00> : vector<80x32xf32>
    %23 = tpu.matmul %20, %22, %cst_22 {dimension_numbers = #tpu.dot_dimension_numbers<[1], [0], [0], [1], [0, 0, 1, 1], [], []>} : vector<80x16xf32>, vector<16x32xf32>, vector<80x32xf32> -> vector<80x32xf32>
    %24 = arith.addf %18, %23 : vector<80x32xf32>
    %c0_23 = arith.constant 0 : index
    %c11 = arith.constant 11 : index
    %c0_24 = arith.constant 0 : index
    %25 = vector.load %arg1[%c0_23, %c11, %c0_24] : memref<1x102x16xf32, #tpu.memory_space<vmem>>, vector<1x80x16xf32>
    %26 = vector.shape_cast %25 : vector<1x80x16xf32> to vector<80x16xf32>
    %c4 = arith.constant 4 : index
    %c0_25 = arith.constant 0 : index
    %c0_26 = arith.constant 0 : index
    %27 = vector.load %arg3[%c4, %c0_25, %c0_26] : memref<9x16x32xf32, #tpu.memory_space<vmem>>, vector<1x16x32xf32>
    %28 = vector.shape_cast %27 : vector<1x16x32xf32> to vector<16x32xf32>
    %cst_27 = arith.constant dense<0.000000e+00> : vector<80x32xf32>
    %29 = tpu.matmul %26, %28, %cst_27 {dimension_numbers = #tpu.dot_dimension_numbers<[1], [0], [0], [1], [0, 0, 1, 1], [], []>} : vector<80x16xf32>, vector<16x32xf32>, vector<80x32xf32> -> vector<80x32xf32>
    %30 = arith.addf %24, %29 : vector<80x32xf32>
    %c0_28 = arith.constant 0 : index
    %c12 = arith.constant 12 : index
    %c0_29 = arith.constant 0 : index
    %31 = vector.load %arg1[%c0_28, %c12, %c0_29] : memref<1x102x16xf32, #tpu.memory_space<vmem>>, vector<1x80x16xf32>
    %32 = vector.shape_cast %31 : vector<1x80x16xf32> to vector<80x16xf32>
    %c5 = arith.constant 5 : index
    %c0_30 = arith.constant 0 : index
    %c0_31 = arith.constant 0 : index
    %33 = vector.load %arg3[%c5, %c0_30, %c0_31] : memref<9x16x32xf32, #tpu.memory_space<vmem>>, vector<1x16x32xf32>
    %34 = vector.shape_cast %33 : vector<1x16x32xf32> to vector<16x32xf32>
    %cst_32 = arith.constant dense<0.000000e+00> : vector<80x32xf32>
    %35 = tpu.matmul %32, %34, %cst_32 {dimension_numbers = #tpu.dot_dimension_numbers<[1], [0], [0], [1], [0, 0, 1, 1], [], []>} : vector<80x16xf32>, vector<16x32xf32>, vector<80x32xf32> -> vector<80x32xf32>
    %36 = arith.addf %30, %35 : vector<80x32xf32>
    %c0_33 = arith.constant 0 : index
    %c20 = arith.constant 20 : index
    %c0_34 = arith.constant 0 : index
    %37 = vector.load %arg1[%c0_33, %c20, %c0_34] : memref<1x102x16xf32, #tpu.memory_space<vmem>>, vector<1x80x16xf32>
    %38 = vector.shape_cast %37 : vector<1x80x16xf32> to vector<80x16xf32>
    %c6 = arith.constant 6 : index
    %c0_35 = arith.constant 0 : index
    %c0_36 = arith.constant 0 : index
    %39 = vector.load %arg3[%c6, %c0_35, %c0_36] : memref<9x16x32xf32, #tpu.memory_space<vmem>>, vector<1x16x32xf32>
    %40 = vector.shape_cast %39 : vector<1x16x32xf32> to vector<16x32xf32>
    %cst_37 = arith.constant dense<0.000000e+00> : vector<80x32xf32>
    %41 = tpu.matmul %38, %40, %cst_37 {dimension_numbers = #tpu.dot_dimension_numbers<[1], [0], [0], [1], [0, 0, 1, 1], [], []>} : vector<80x16xf32>, vector<16x32xf32>, vector<80x32xf32> -> vector<80x32xf32>
    %42 = arith.addf %36, %41 : vector<80x32xf32>
    %c0_38 = arith.constant 0 : index
    %c21 = arith.constant 21 : index
    %c0_39 = arith.constant 0 : index
    %43 = vector.load %arg1[%c0_38, %c21, %c0_39] : memref<1x102x16xf32, #tpu.memory_space<vmem>>, vector<1x80x16xf32>
    %44 = vector.shape_cast %43 : vector<1x80x16xf32> to vector<80x16xf32>
    %c7 = arith.constant 7 : index
    %c0_40 = arith.constant 0 : index
    %c0_41 = arith.constant 0 : index
    %45 = vector.load %arg3[%c7, %c0_40, %c0_41] : memref<9x16x32xf32, #tpu.memory_space<vmem>>, vector<1x16x32xf32>
    %46 = vector.shape_cast %45 : vector<1x16x32xf32> to vector<16x32xf32>
    %cst_42 = arith.constant dense<0.000000e+00> : vector<80x32xf32>
    %47 = tpu.matmul %44, %46, %cst_42 {dimension_numbers = #tpu.dot_dimension_numbers<[1], [0], [0], [1], [0, 0, 1, 1], [], []>} : vector<80x16xf32>, vector<16x32xf32>, vector<80x32xf32> -> vector<80x32xf32>
    %48 = arith.addf %42, %47 : vector<80x32xf32>
    %c0_43 = arith.constant 0 : index
    %c22 = arith.constant 22 : index
    %c0_44 = arith.constant 0 : index
    %49 = vector.load %arg1[%c0_43, %c22, %c0_44] : memref<1x102x16xf32, #tpu.memory_space<vmem>>, vector<1x80x16xf32>
    %50 = vector.shape_cast %49 : vector<1x80x16xf32> to vector<80x16xf32>
    %c8 = arith.constant 8 : index
    %c0_45 = arith.constant 0 : index
    %c0_46 = arith.constant 0 : index
    %51 = vector.load %arg3[%c8, %c0_45, %c0_46] : memref<9x16x32xf32, #tpu.memory_space<vmem>>, vector<1x16x32xf32>
    %52 = vector.shape_cast %51 : vector<1x16x32xf32> to vector<16x32xf32>
    %cst_47 = arith.constant dense<0.000000e+00> : vector<80x32xf32>
    %53 = tpu.matmul %50, %52, %cst_47 {dimension_numbers = #tpu.dot_dimension_numbers<[1], [0], [0], [1], [0, 0, 1, 1], [], []>} : vector<80x16xf32>, vector<16x32xf32>, vector<80x32xf32> -> vector<80x32xf32>
    %54 = arith.addf %48, %53 : vector<80x32xf32>
    %c0_48 = arith.constant 0 : index
    %c0_49 = arith.constant 0 : index
    %55 = vector.load %arg4[%c0_48, %c0_49] : memref<1x32xf32, #tpu.memory_space<vmem>>, vector<1x32xf32>
    %56 = vector.broadcast %55 : vector<1x32xf32> to vector<80x32xf32>
    %57 = arith.addf %54, %56 : vector<80x32xf32>
    %cst_50 = arith.constant 0.000000e+00 : f32
    %58 = vector.broadcast %cst_50 : f32 to vector<80x32xf32>
    %59 = arith.maximumf %57, %58 : vector<80x32xf32>
    %c0_51 = arith.constant 0 : index
    %c0_52 = arith.constant 0 : index
    %60 = vector.load %arg2[%c0_51, %c0_52] : memref<80x1xf32, #tpu.memory_space<vmem>>, vector<80x1xf32>
    %61 = vector.broadcast %60 : vector<80x1xf32> to vector<80x32xf32>
    %62 = arith.mulf %59, %61 : vector<80x32xf32>
    %cst_53 = arith.constant 0.000000e+00 : f32
    %63 = vector.broadcast %cst_53 : f32 to vector<11x32xf32>
    %c0_54 = arith.constant 0 : index
    %c0_55 = arith.constant 0 : index
    %64 = vector.load %arg9[%c0_54, %c0_55] : memref<102x32xf32, #tpu.memory_space<vmem>>, vector<11x32xf32>
    tpu.vector_store %arg9[%c0_54, %c0_55], %63 {strides = array<i32>} : memref<102x32xf32, #tpu.memory_space<vmem>>, vector<11x32xf32>,
    %cst_56 = arith.constant 0.000000e+00 : f32
    %65 = vector.broadcast %cst_56 : f32 to vector<11x32xf32>
    %c91 = arith.constant 91 : index
    %c0_57 = arith.constant 0 : index
    %66 = vector.load %arg9[%c91, %c0_57] : memref<102x32xf32, #tpu.memory_space<vmem>>, vector<11x32xf32>
    tpu.vector_store %arg9[%c91, %c0_57], %65 {strides = array<i32>} : memref<102x32xf32, #tpu.memory_space<vmem>>, vector<11x32xf32>,
    %c11_58 = arith.constant 11 : index
    %c0_59 = arith.constant 0 : index
    %67 = vector.load %arg9[%c11_58, %c0_59] : memref<102x32xf32, #tpu.memory_space<vmem>>, vector<80x32xf32>
    tpu.vector_store %arg9[%c11_58, %c0_59], %62 {strides = array<i32>} : memref<102x32xf32, #tpu.memory_space<vmem>>, vector<80x32xf32>,
    %cst_60 = arith.constant 0.000000e+00 : f32
    %68 = vector.broadcast %cst_60 : f32 to vector<80x32xf32>
    %c0_61 = arith.constant 0 : index
    %c0_62 = arith.constant 0 : index
    %69 = vector.load %arg9[%c0_61, %c0_62] : memref<102x32xf32, #tpu.memory_space<vmem>>, vector<80x32xf32>
    %c0_63 = arith.constant 0 : index
    %c0_64 = arith.constant 0 : index
    %c0_65 = arith.constant 0 : index
    %70 = vector.load %arg5[%c0_63, %c0_64, %c0_65] : memref<9x32x32xf32, #tpu.memory_space<vmem>>, vector<1x32x32xf32>
    %71 = vector.shape_cast %70 : vector<1x32x32xf32> to vector<32x32xf32>
    %cst_66 = arith.constant dense<0.000000e+00> : vector<80x32xf32>
    %72 = tpu.matmul %69, %71, %cst_66 {dimension_numbers = #tpu.dot_dimension_numbers<[1], [0], [0], [1], [0, 0, 1, 1], [], []>} : vector<80x32xf32>, vector<32x32xf32>, vector<80x32xf32> -> vector<80x32xf32>
    %73 = arith.addf %68, %72 : vector<80x32xf32>
    %c1_67 = arith.constant 1 : index
    %c0_68 = arith.constant 0 : index
    %74 = vector.load %arg9[%c1_67, %c0_68] : memref<102x32xf32, #tpu.memory_space<vmem>>, vector<80x32xf32>
    %c1_69 = arith.constant 1 : index
    %c0_70 = arith.constant 0 : index
    %c0_71 = arith.constant 0 : index
    %75 = vector.load %arg5[%c1_69, %c0_70, %c0_71] : memref<9x32x32xf32, #tpu.memory_space<vmem>>, vector<1x32x32xf32>
    %76 = vector.shape_cast %75 : vector<1x32x32xf32> to vector<32x32xf32>
    %cst_72 = arith.constant dense<0.000000e+00> : vector<80x32xf32>
    %77 = tpu.matmul %74, %76, %cst_72 {dimension_numbers = #tpu.dot_dimension_numbers<[1], [0], [0], [1], [0, 0, 1, 1], [], []>} : vector<80x32xf32>, vector<32x32xf32>, vector<80x32xf32> -> vector<80x32xf32>
    %78 = arith.addf %73, %77 : vector<80x32xf32>
    %c2_73 = arith.constant 2 : index
    %c0_74 = arith.constant 0 : index
    %79 = vector.load %arg9[%c2_73, %c0_74] : memref<102x32xf32, #tpu.memory_space<vmem>>, vector<80x32xf32>
    %c2_75 = arith.constant 2 : index
    %c0_76 = arith.constant 0 : index
    %c0_77 = arith.constant 0 : index
    %80 = vector.load %arg5[%c2_75, %c0_76, %c0_77] : memref<9x32x32xf32, #tpu.memory_space<vmem>>, vector<1x32x32xf32>
    %81 = vector.shape_cast %80 : vector<1x32x32xf32> to vector<32x32xf32>
    %cst_78 = arith.constant dense<0.000000e+00> : vector<80x32xf32>
    %82 = tpu.matmul %79, %81, %cst_78 {dimension_numbers = #tpu.dot_dimension_numbers<[1], [0], [0], [1], [0, 0, 1, 1], [], []>} : vector<80x32xf32>, vector<32x32xf32>, vector<80x32xf32> -> vector<80x32xf32>
    %83 = arith.addf %78, %82 : vector<80x32xf32>
    %c10_79 = arith.constant 10 : index
    %c0_80 = arith.constant 0 : index
    %84 = vector.load %arg9[%c10_79, %c0_80] : memref<102x32xf32, #tpu.memory_space<vmem>>, vector<80x32xf32>
    %c3_81 = arith.constant 3 : index
    %c0_82 = arith.constant 0 : index
    %c0_83 = arith.constant 0 : index
    %85 = vector.load %arg5[%c3_81, %c0_82, %c0_83] : memref<9x32x32xf32, #tpu.memory_space<vmem>>, vector<1x32x32xf32>
    %86 = vector.shape_cast %85 : vector<1x32x32xf32> to vector<32x32xf32>
    %cst_84 = arith.constant dense<0.000000e+00> : vector<80x32xf32>
    %87 = tpu.matmul %84, %86, %cst_84 {dimension_numbers = #tpu.dot_dimension_numbers<[1], [0], [0], [1], [0, 0, 1, 1], [], []>} : vector<80x32xf32>, vector<32x32xf32>, vector<80x32xf32> -> vector<80x32xf32>
    %88 = arith.addf %83, %87 : vector<80x32xf32>
    %c11_85 = arith.constant 11 : index
    %c0_86 = arith.constant 0 : index
    %89 = vector.load %arg9[%c11_85, %c0_86] : memref<102x32xf32, #tpu.memory_space<vmem>>, vector<80x32xf32>
    %c4_87 = arith.constant 4 : index
    %c0_88 = arith.constant 0 : index
    %c0_89 = arith.constant 0 : index
    %90 = vector.load %arg5[%c4_87, %c0_88, %c0_89] : memref<9x32x32xf32, #tpu.memory_space<vmem>>, vector<1x32x32xf32>
    %91 = vector.shape_cast %90 : vector<1x32x32xf32> to vector<32x32xf32>
    %cst_90 = arith.constant dense<0.000000e+00> : vector<80x32xf32>
    %92 = tpu.matmul %89, %91, %cst_90 {dimension_numbers = #tpu.dot_dimension_numbers<[1], [0], [0], [1], [0, 0, 1, 1], [], []>} : vector<80x32xf32>, vector<32x32xf32>, vector<80x32xf32> -> vector<80x32xf32>
    %93 = arith.addf %88, %92 : vector<80x32xf32>
    %c12_91 = arith.constant 12 : index
    %c0_92 = arith.constant 0 : index
    %94 = vector.load %arg9[%c12_91, %c0_92] : memref<102x32xf32, #tpu.memory_space<vmem>>, vector<80x32xf32>
    %c5_93 = arith.constant 5 : index
    %c0_94 = arith.constant 0 : index
    %c0_95 = arith.constant 0 : index
    %95 = vector.load %arg5[%c5_93, %c0_94, %c0_95] : memref<9x32x32xf32, #tpu.memory_space<vmem>>, vector<1x32x32xf32>
    %96 = vector.shape_cast %95 : vector<1x32x32xf32> to vector<32x32xf32>
    %cst_96 = arith.constant dense<0.000000e+00> : vector<80x32xf32>
    %97 = tpu.matmul %94, %96, %cst_96 {dimension_numbers = #tpu.dot_dimension_numbers<[1], [0], [0], [1], [0, 0, 1, 1], [], []>} : vector<80x32xf32>, vector<32x32xf32>, vector<80x32xf32> -> vector<80x32xf32>
    %98 = arith.addf %93, %97 : vector<80x32xf32>
    %c20_97 = arith.constant 20 : index
    %c0_98 = arith.constant 0 : index
    %99 = vector.load %arg9[%c20_97, %c0_98] : memref<102x32xf32, #tpu.memory_space<vmem>>, vector<80x32xf32>
    %c6_99 = arith.constant 6 : index
    %c0_100 = arith.constant 0 : index
    %c0_101 = arith.constant 0 : index
    %100 = vector.load %arg5[%c6_99, %c0_100, %c0_101] : memref<9x32x32xf32, #tpu.memory_space<vmem>>, vector<1x32x32xf32>
    %101 = vector.shape_cast %100 : vector<1x32x32xf32> to vector<32x32xf32>
    %cst_102 = arith.constant dense<0.000000e+00> : vector<80x32xf32>
    %102 = tpu.matmul %99, %101, %cst_102 {dimension_numbers = #tpu.dot_dimension_numbers<[1], [0], [0], [1], [0, 0, 1, 1], [], []>} : vector<80x32xf32>, vector<32x32xf32>, vector<80x32xf32> -> vector<80x32xf32>
    %103 = arith.addf %98, %102 : vector<80x32xf32>
    %c21_103 = arith.constant 21 : index
    %c0_104 = arith.constant 0 : index
    %104 = vector.load %arg9[%c21_103, %c0_104] : memref<102x32xf32, #tpu.memory_space<vmem>>, vector<80x32xf32>
    %c7_105 = arith.constant 7 : index
    %c0_106 = arith.constant 0 : index
    %c0_107 = arith.constant 0 : index
    %105 = vector.load %arg5[%c7_105, %c0_106, %c0_107] : memref<9x32x32xf32, #tpu.memory_space<vmem>>, vector<1x32x32xf32>
    %106 = vector.shape_cast %105 : vector<1x32x32xf32> to vector<32x32xf32>
    %cst_108 = arith.constant dense<0.000000e+00> : vector<80x32xf32>
    %107 = tpu.matmul %104, %106, %cst_108 {dimension_numbers = #tpu.dot_dimension_numbers<[1], [0], [0], [1], [0, 0, 1, 1], [], []>} : vector<80x32xf32>, vector<32x32xf32>, vector<80x32xf32> -> vector<80x32xf32>
    %108 = arith.addf %103, %107 : vector<80x32xf32>
    %c22_109 = arith.constant 22 : index
    %c0_110 = arith.constant 0 : index
    %109 = vector.load %arg9[%c22_109, %c0_110] : memref<102x32xf32, #tpu.memory_space<vmem>>, vector<80x32xf32>
    %c8_111 = arith.constant 8 : index
    %c0_112 = arith.constant 0 : index
    %c0_113 = arith.constant 0 : index
    %110 = vector.load %arg5[%c8_111, %c0_112, %c0_113] : memref<9x32x32xf32, #tpu.memory_space<vmem>>, vector<1x32x32xf32>
    %111 = vector.shape_cast %110 : vector<1x32x32xf32> to vector<32x32xf32>
    %cst_114 = arith.constant dense<0.000000e+00> : vector<80x32xf32>
    %112 = tpu.matmul %109, %111, %cst_114 {dimension_numbers = #tpu.dot_dimension_numbers<[1], [0], [0], [1], [0, 0, 1, 1], [], []>} : vector<80x32xf32>, vector<32x32xf32>, vector<80x32xf32> -> vector<80x32xf32>
    %113 = arith.addf %108, %112 : vector<80x32xf32>
    %c0_115 = arith.constant 0 : index
    %c0_116 = arith.constant 0 : index
    %114 = vector.load %arg6[%c0_115, %c0_116] : memref<1x32xf32, #tpu.memory_space<vmem>>, vector<1x32xf32>
    %115 = vector.broadcast %114 : vector<1x32xf32> to vector<80x32xf32>
    %116 = arith.addf %113, %115 : vector<80x32xf32>
    %cst_117 = arith.constant 0.000000e+00 : f32
    %117 = vector.broadcast %cst_117 : f32 to vector<80x32xf32>
    %118 = arith.maximumf %116, %117 : vector<80x32xf32>
    %c0_118 = arith.constant 0 : index
    %c0_119 = arith.constant 0 : index
    %c0_120 = arith.constant 0 : index
    %119 = vector.load %arg7[%c0_118, %c0_119, %c0_120] : memref<1x80x32xf32, #tpu.memory_space<vmem>>, vector<1x80x32xf32>
    %120 = vector.shape_cast %119 : vector<1x80x32xf32> to vector<80x32xf32>
    %121 = vector.shape_cast %118 : vector<80x32xf32> to vector<1x80x32xf32>
    tpu.vector_store %arg7[%c0_118, %c0_119, %c0_120], %121 {strides = array<i32>} : memref<1x80x32xf32, #tpu.memory_space<vmem>>, vector<1x80x32xf32>,
    %122 = vector.extract_strided_slice %118 {offsets = [0, 0], sizes = [80, 8], strides = [1, 1]} : vector<80x32xf32> to vector<80x8xf32>
    %123 = vector.extract_strided_slice %118 {offsets = [0, 8], sizes = [80, 8], strides = [1, 1]} : vector<80x32xf32> to vector<80x8xf32>
    %124 = arith.maximumf %122, %123 : vector<80x8xf32>
    %125 = vector.extract_strided_slice %118 {offsets = [0, 16], sizes = [80, 8], strides = [1, 1]} : vector<80x32xf32> to vector<80x8xf32>
    %126 = vector.extract_strided_slice %118 {offsets = [0, 24], sizes = [80, 8], strides = [1, 1]} : vector<80x32xf32> to vector<80x8xf32>
    %127 = arith.maximumf %125, %126 : vector<80x8xf32>
    %128 = arith.maximumf %124, %127 : vector<80x8xf32>
    %c0_121 = arith.constant 0 : index
    %c0_122 = arith.constant 0 : index
    %c0_123 = arith.constant 0 : index
    %129 = vector.load %arg8[%c0_121, %c0_122, %c0_123] : memref<1x80x8xf32, #tpu.memory_space<vmem>>, vector<1x80x8xf32>
    %130 = vector.shape_cast %129 : vector<1x80x8xf32> to vector<80x8xf32>
    %131 = vector.shape_cast %128 : vector<80x8xf32> to vector<1x80x8xf32>
    tpu.vector_store %arg8[%c0_121, %c0_122, %c0_123], %131 {strides = array<i32>} : memref<1x80x8xf32, #tpu.memory_space<vmem>>, vector<1x80x8xf32>,
    return
  }
  func.func @transform_0(%arg0: i32) -> (i32, i32, i32) {
    %c0_i32 = arith.constant 0 : i32
    %c0_i32_0 = arith.constant 0 : i32
    %c0_i32_1 = arith.constant 0 : i32
    return %arg0, %c0_i32, %c0_i32_0 : i32, i32, i32
  }
  func.func @transform_1(%arg0: i32) -> (i32, i32) {
    %c0_i32 = arith.constant 0 : i32
    %c0_i32_0 = arith.constant 0 : i32
    %c0_i32_1 = arith.constant 0 : i32
    return %c0_i32, %c0_i32_0 : i32, i32
  }
  func.func @transform_2(%arg0: i32) -> (i32, i32, i32) {
    %c0_i32 = arith.constant 0 : i32
    %c0_i32_0 = arith.constant 0 : i32
    %c0_i32_1 = arith.constant 0 : i32
    %c0_i32_2 = arith.constant 0 : i32
    return %c0_i32, %c0_i32_0, %c0_i32_1 : i32, i32, i32
  }
  func.func @transform_3(%arg0: i32) -> (i32, i32) {
    %c0_i32 = arith.constant 0 : i32
    %c0_i32_0 = arith.constant 0 : i32
    %c0_i32_1 = arith.constant 0 : i32
    return %c0_i32, %c0_i32_0 : i32, i32
  }
  func.func @transform_4(%arg0: i32) -> (i32, i32, i32) {
    %c0_i32 = arith.constant 0 : i32
    %c0_i32_0 = arith.constant 0 : i32
    %c0_i32_1 = arith.constant 0 : i32
    %c0_i32_2 = arith.constant 0 : i32
    return %c0_i32, %c0_i32_0, %c0_i32_1 : i32, i32, i32
  }
  func.func @transform_5(%arg0: i32) -> (i32, i32) {
    %c0_i32 = arith.constant 0 : i32
    %c0_i32_0 = arith.constant 0 : i32
    %c0_i32_1 = arith.constant 0 : i32
    return %c0_i32, %c0_i32_0 : i32, i32
  }
  func.func @transform_6(%arg0: i32) -> (i32, i32, i32) {
    %c0_i32 = arith.constant 0 : i32
    %c0_i32_0 = arith.constant 0 : i32
    %c0_i32_1 = arith.constant 0 : i32
    return %arg0, %c0_i32, %c0_i32_0 : i32, i32, i32
  }
  func.func @transform_7(%arg0: i32) -> (i32, i32, i32) {
    %c0_i32 = arith.constant 0 : i32
    %c0_i32_0 = arith.constant 0 : i32
    %c0_i32_1 = arith.constant 0 : i32
    return %arg0, %c0_i32, %c0_i32_0 : i32, i32, i32
  }
}

</mosaic_0001>

<bundles_post_ra>
// kernel: tpu_custom_call.1
= control target key start
LH: loop header
LB: loop body
LE: loop exit
PB: predicated region body
PF: predicated region fallthrough
CT: control target
= control target key end

     0   :  { %13 = vsyncpa [#allocation4], 0  ;;  %s4891_s24 = smov 0   ;;  %s5422_s0 = inlined_call_operand.vmem [shape: f32[2,102,16], index: 0, kind: input, shape index: {}]   ;;  %s5423_s1 = inlined_call_operand.vmem [shape: f32[80,1], index: 1, kind: input, shape index: {}]   ;;  %s5424_s2 = inlined_call_operand.hbm [shape: f32[9,16,32], index: 2, kind: input, shape index: {}]   ;;  %s5425_s3 = inlined_call_operand.vmem [shape: f32[1,32], index: 3, kind: input, shape index: {}]   ;;  %s5426_s4 = inlined_call_operand.vmem [shape: f32[9,32,32], index: 4, kind: input, shape index: {}]   ;;  %s5427_s5 = inlined_call_operand.vmem [shape: f32[1,32], index: 5, kind: input, shape index: {}]   ;;  %s5428_s6 = inlined_call_operand.vmem [shape: f32[2,80,32], index: 6, kind: output, shape index: {0}]   ;;  %s5429_s7 = inlined_call_operand.vmem [shape: f32[2,80,8], index: 7, kind: output, shape index: {1}]  }
   0x1 LB: > { %s4897_s25 = sadd.s32 4294967295, %s4842_s24   ;;  %p3671_p0 = scmp.ge.s32.totalorder %s4842_s24, 1  ;;  %s4842_s24 = sphi %s4891_s24, %s19_s24  }
   0x2   : > { %p207_p1 = scmp.lt.s32.totalorder %s4842_s24, 3  ;;  %s4844_s26 = smov [#allocation3]  }
   0x3   : > { %s222_s27 = sshll.u32 %s4844_s26, 4  ;;  %p5430_p3 = scmp.eq.s32.totalorder %s4897_s25, 0  ;;  %s223_s27 = int_to_ptr.vmem [resolvable:$true] %s222_s27 }
   0x4   : > { %p4901_p2 = pnand %p3671_p0, %p207_p1  ;;  %s4804_s9 = scalar_lea.hbm %s5424_s2, 2304 }
   0x5   : > { %p4805_p6 = scmp.ne.s32.totalorder %s5424_s2, %s4804_s9  ;;  %p4811_p10 = scmp.lt.u32.totalorder %s4804_s9, %s5424_s2 }
   0x6   : > { %s5432_s28 = scalar_select %p4901_p2, 1, 0 }
   0x7   : > { %p4781_p4 = pneg %p4901_p2 }
   0x9   : > { %p4910_p5 = pnand %p5430_p3, %p4781_p4 }
   0xb   : > { %p4806_p7 = pneg %p4910_p5 }
   0xd   : > { %p4807_p8 = pnand %p4806_p7, %p4805_p6 }
   0xf   : > { %p4808_p9 = pneg %p4807_p8 }
  0x11   : > { %p4813_p11 = pnand %p4811_p10, %p4808_p9 }
  0x13   : > { %4816 = shalt.err (!%p4813_p11)
}
  0x14   : > { %s4817_s14 = scalar_lea.vmem %s223_s27, 2304  ;;  %p4825_p1 = scmp.lt.s32.totalorder %s223_s27, %s223_s27 }
  0x15   : > { %p4818_p12 = scmp.ne.s32.totalorder %s223_s27, %s4817_s14  ;;  %p4826_p4 = scmp.lt.s32.totalorder %s4817_s14, %s4817_s14 }
  0x17   : > { %p4820_p13 = pnand %p4818_p12, %p4806_p7  ;;  %p4827_p3 = por %p4826_p4, %p4825_p1 }
  0x19   : > { %p4821_p0 = pneg %p4820_p13 }
  0x1b   : > { %p4828_p2 = pnand %p4827_p3, %p4821_p0 }
  0x1d   : > { %4831 = shalt.err (!%p4828_p2)
}
  0x1e   : > { %s4845_s15 = smov 128   ;;  %s4846_s16 = smov 8  }
  0x1f   : > { %4784 = dma.hbm_to_vmem [thread:$0]  (!%p4910_p5), %s5424_s2, 2304, %s223_s27, [#allocation4], %s4845_s15, %s4845_s15, %s4846_s16  }
  0x20   : > { %p5434_p6 = scmp.ne.s32.totalorder %s5432_s28, 0 }
  0x21   : > { %p5435_p8 = scmp.eq.s32.totalorder (!%p5434_p6), %s4897_s25, 0 }
  0x22   : > { %255 = sbr.rel (%p5434_p6) target bundleno = 1065 (0x429), region = 44 }
  0x29   : > { %4837 = dma.done.wait (%p5435_p8), [#allocation4], 2304   ;;  %p5436_p7 = pmov %p5435_p8 }
  0x2a   : > { %p292_p2 = scmp.lt.s32.totalorder %s4897_s25, 1  ;;  %vm332_vm0 = vcmask 130048   ;;  %v330_v0 = vld [vmem:[#allocation3 + $0x10] sm:$0xff]  ;;  %v331_v1 = vld [vmem:[#allocation3 + $0x18] sm:$0xff]  ;;  %v317_v4 = vld [vmem:[#allocation3] sm:$0xff]  ;;  %v4847_v45 = vmov 0  }
  0x2b   : > { %4839 = vsyncadd (%p5436_p7), [#allocation4], 4294964992  ;;  %v4507_v3 = vpack.c.bf16 %v331_v1, %v330_v0  ;;  %v318_v5 = vld [vmem:[#allocation3 + $0x8] sm:$0xff]  ;;  %v634_v9 = vld [vmem:[#allocation3 + $0x20] sm:$0xff]  ;;  %4802 = vset.pattern.permute.xlu0 %v4847_v45  ;;  %4803 = vset.pattern.permute.xlu1 %v4847_v45  ;;  %vm1896_vm1 = vcmask 261120   ;;  %vm1898_vm2 = vcmask 256000  }
  0x2c   : > { %s5438_s25 = smov (!%p292_p2, %s4897_s25), 1  ;;  %v4511_v6 = vpack.c.bf16 %v318_v5, %v317_v4  ;;  %v635_v10 = vld [vmem:[#allocation3 + $0x28] sm:$0xff]  ;;  %v802_v20 = vld [vmem:[#allocation3 + $0x30] sm:$0xff]  ;;  %v803_v21 = vld [vmem:[#allocation3 + $0x38] sm:$0xff]  ;;  %s4849_s18 = smov 120   ;;  %vm3558_vm3 = vcmask 64512  }
  0x2d   : > { %s4775_s19 = smul.u32 104, %s5438_s25  ;;  %4508 = vmatprep.subr.bf16.mxu0 %v4507_v3  ;;  %v4515_v11 = vpack.c.bf16 %v635_v10, %v634_v9  ;;  %v4519_v24 = vpack.c.bf16 %v803_v21, %v802_v20  ;;  %v970_v33 = vld [vmem:[#allocation3 + $0x40] sm:$0xff]  ;;  %v971_v34 = vld [vmem:[#allocation3 + $0x48] sm:$0xff]  ;;  %v1826_v42 = vld [vmem:[%s5423_s1] sm:$0xff] }
  0x2e   : > { %4510 = vmatpush3.bf16.msra.mxu0 %v4507_v3  ;;  %v4523_v37 = vpack.c.bf16 %v971_v34, %v970_v33  ;;  %v1828_v43 = vld [vmem:[%s5423_s1 + $0x10] sm:$0xff]  ;;  %1838 = vperm.xlu0 %4802, %v1826_v42   ;;  %v1827_v47 = vld [vmem:[%s5423_s1 + $0x8] sm:$0xff]  ;;  %v1829_v48 = vld [vmem:[%s5423_s1 + $0x18] sm:$0xff]  ;;  %s4776_s12 = smul.u32 80, %s5438_s25 }
  0x2f   : > { %s4944_s22 = scalar_lea.vmem %s5422_s0, %s4775_s19  ;;  %4512 = vmatprep.subr.bf16.mxu0 %v4511_v6  ;;  %1848 = vperm.xlu1 %4803, %v1828_v43   ;;  %v1138_v50 = vld [vmem:[#allocation3 + $0x50] sm:$0xff]  ;;  %v1139_v51 = vld [vmem:[#allocation3 + $0x58] sm:$0xff]  ;;  %v1831_v53 = vld [vmem:[%s5423_s1 + $0x28] sm:$0xff]  ;;  %s4850_s19 = smov 112  }
  0x30   : > { %v319_v2 = vld [vmem:[%s4944_s22 + $0x1] sm:$0xff]  ;;  %v320_v7 = vld [vmem:[%s4944_s22 + $0x9] sm:$0xff]  ;;  %v321_v8 = vld [vmem:[%s4944_s22 + $0x11] sm:$0xff]  ;;  %v4527_v54 = vpack.c.bf16 %v1139_v51, %v1138_v50  ;;  %s5360_s17 = scalar_lea.vmem %s5428_s6, %s4776_s12  ;;  %s5397_s23 = scalar_lea.vmem %s5429_s7, %s4776_s12 }
  0x31   : > { %4133 = vmatprep.mubr.msk.f32.mxu0 %vm332_vm0, %v319_v2  ;;  %v322_v12 = vld [vmem:[%s4944_s22 + $0x19] sm:$0xff]  ;;  %v323_v13 = vld [vmem:[%s4944_s22 + $0x21] sm:$0xff]  ;;  %v324_v14 = vld [vmem:[%s4944_s22 + $0x29] sm:$0xff] }
  0x32   : > { %4134 = vmatmul.mubr.msk.f32.vlgmr.msra.gmra.mrb[0].mxu0 %vm332_vm0, %v320_v7  ;;  %v325_v15 = vld [vmem:[%s4944_s22 + $0x31] sm:$0xff]  ;;  %v326_v16 = vld [vmem:[%s4944_s22 + $0x39] sm:$0xff]  ;;  %v327_v17 = vld [vmem:[%s4944_s22 + $0x41] sm:$0xff]  ;;  %1843 = vperm.xlu0 %4802, %v1827_v47  }
  0x33   : > { %4514 = vmatpush3.bf16.msra.mxu0 %v4511_v6  ;;  %4136 = vmatprep.mubr.msk.f32.mxu0 %vm332_vm0, %v321_v8  ;;  %v328_v18 = vld [vmem:[%s4944_s22 + $0x49] sm:$0xff]  ;;  %v307_v19 = vld [vmem:[%s4944_s22] sm:$0xff]  ;;  %v310_v25 = vld [vmem:[%s4944_s22 + $0x18] sm:$0xff] }
  0x34   : > { %4516 = vmatprep.subr.bf16.mxu0 %v4515_v11  ;;  %v308_v22 = vld [vmem:[%s4944_s22 + $0x8] sm:$0xff]  ;;  %v309_v23 = vld [vmem:[%s4944_s22 + $0x10] sm:$0xff]  ;;  %v311_v26 = vld [vmem:[%s4944_s22 + $0x20] sm:$0xff]  ;;  %1853 = vperm.xlu1 %4803, %v1829_v48  }
  0x35   : > { %v312_v27 = vld [vmem:[%s4944_s22 + $0x28] sm:$0xff]  ;;  %v313_v28 = vld [vmem:[%s4944_s22 + $0x30] sm:$0xff]  ;;  %v314_v29 = vld [vmem:[%s4944_s22 + $0x38] sm:$0xff] }
  0x36   : > { %4137 = vmatmul.mubr.msk.f32.gmra.mrb[2].mxu0 %vm332_vm0, %v322_v12  ;;  %v315_v30 = vld [vmem:[%s4944_s22 + $0x40] sm:$0xff]  ;;  %v316_v31 = vld [vmem:[%s4944_s22 + $0x48] sm:$0xff]  ;;  %v625_v36 = vld [vmem:[%s4944_s22 + $0x12] sm:$0xff] }
  0x37   : > { %4139 = vmatprep.mubr.msk.f32.mxu0 %vm332_vm0, %v323_v13  ;;  %v623_v32 = vld [vmem:[%s4944_s22 + $0x2] sm:$0xff]  ;;  %v624_v35 = vld [vmem:[%s4944_s22 + $0xa] sm:$0xff]  ;;  %v626_v38 = vld [vmem:[%s4944_s22 + $0x1a] sm:$0xff] }
  0x38   : > { %v627_v39 = vld [vmem:[%s4944_s22 + $0x22] sm:$0xff]  ;;  %v628_v40 = vld [vmem:[%s4944_s22 + $0x2a] sm:$0xff]  ;;  %v629_v41 = vld [vmem:[%s4944_s22 + $0x32] sm:$0xff]  ;;  %1863 = vperm.xlu1 %4803, %v1831_v53  }
  0x39   : > { %v630_v44 = vld [vmem:[%s4944_s22 + $0x3a] sm:$0xff]  ;;  %v631_v46 = vld [vmem:[%s4944_s22 + $0x42] sm:$0xff]  ;;  %v632_v49 = vld [vmem:[%s4944_s22 + $0x4a] sm:$0xff] }
  0x3a   : > { %4140 = vmatmul.mubr.msk.f32.gmra.mrb[4].mxu0 %vm332_vm0, %v324_v14  ;;  %v1830_v52 = vld [vmem:[%s5423_s1 + $0x20] sm:$0xff]  ;;  %v1832_v55 = vld [vmem:[%s5423_s1 + $0x30] sm:$0xff]  ;;  %v1833_v56 = vld [vmem:[%s5423_s1 + $0x38] sm:$0xff] }
  0x3b   : > { %4142 = vmatprep.mubr.msk.f32.mxu0 %vm332_vm0, %v325_v15  ;;  %1858 = vperm.xlu0 %4802, %v1830_v52   ;;  %v1834_v57 = vld [vmem:[%s5423_s1 + $0x40] sm:$0xff]  ;;  %v1835_v58 = vld [vmem:[%s5423_s1 + $0x48] sm:$0xff]  ;;  %v800_v59 = vld [vmem:[%s4944_s22 + $0x52] sm:$0xff] }
  0x3c   : > { %1873 = vperm.xlu1 %4803, %v1833_v56   ;;  %v959_v60 = vld [vmem:[%s4944_s22 + $0xb] sm:$0xff]  ;;  %v960_v63 = vld [vmem:[%s4944_s22 + $0x13] sm:$0xff]  ;;  %v961_v0 = vld [vmem:[%s4944_s22 + $0x1b] sm:$0xff] }
  0x3d   : > { %v1306_v61 = vld [vmem:[#allocation3 + $0x60] sm:$0xff]  ;;  %v1307_v62 = vld [vmem:[#allocation3 + $0x68] sm:$0xff]  ;;  %v965_v5 = vld [vmem:[%s4944_s22 + $0x3b] sm:$0xff] }
  0x3e   : > { %4143 = vmatmul.mubr.msk.f32.gmra.mrb[6].mxu0 %vm332_vm0, %v326_v16  ;;  %v4531_v1 = vpack.c.bf16 %v1307_v62, %v1306_v61  ;;  %v962_v2 = vld [vmem:[%s4944_s22 + $0x23] sm:$0xff]  ;;  %v963_v3 = vld [vmem:[%s4944_s22 + $0x2b] sm:$0xff]  ;;  %v964_v4 = vld [vmem:[%s4944_s22 + $0x33] sm:$0xff] }
  0x3f   : > { %4145 = vmatprep.mubr.msk.f32.mxu0 %vm332_vm0, %v327_v17  ;;  %1868 = vperm.xlu0 %4802, %v1832_v55   ;;  %v966_v6 = vld [vmem:[%s4944_s22 + $0x43] sm:$0xff]  ;;  %v967_v7 = vld [vmem:[%s4944_s22 + $0x4b] sm:$0xff]  ;;  %v968_v8 = vld [vmem:[%s4944_s22 + $0x53] sm:$0xff] }
  0x40   : > { %1883 = vperm.xlu1 %4803, %v1835_v58   ;;  %v1127_v9 = vld [vmem:[%s4944_s22 + $0xc] sm:$0xff]  ;;  %v1474_v10 = vld [vmem:[#allocation3 + $0x70] sm:$0xff]  ;;  %v1130_v15 = vld [vmem:[%s4944_s22 + $0x24] sm:$0xff] }
  0x41   : > { %v1128_v12 = vld [vmem:[%s4944_s22 + $0x14] sm:$0xff]  ;;  %v1129_v13 = vld [vmem:[%s4944_s22 + $0x1c] sm:$0xff]  ;;  %v1131_v16 = vld [vmem:[%s4944_s22 + $0x2c] sm:$0xff] }
  0x42   : > { %4146 = vmatmul.mubr.msk.f32.gmra.mrb[8].mxu0 %vm332_vm0, %v328_v18  ;;  %v1132_v17 = vld [vmem:[%s4944_s22 + $0x34] sm:$0xff]  ;;  %v1133_v18 = vld [vmem:[%s4944_s22 + $0x3c] sm:$0xff]  ;;  %v1135_v20 = vld [vmem:[%s4944_s22 + $0x4c] sm:$0xff] }
  0x43   : > { %4152 = vmatprep.mubr.msk.f32.mxu0 %vm332_vm0, %v307_v19  ;;  %1878 = vperm.xlu0 %4802, %v1834_v57   ;;  %v1134_v19 = vld [vmem:[%s4944_s22 + $0x44] sm:$0xff]  ;;  %v1136_v21 = vld [vmem:[%s4944_s22 + $0x54] sm:$0xff] }
  0x44   : > { %v1470_v33 = vld [vmem:[%s4944_s22 + $0x4d] sm:$0xff]  ;;  %v1471_v34 = vld [vmem:[%s4944_s22 + $0x55] sm:$0xff]  ;;  %v1640_v45 = vld [vmem:[%s4944_s22 + $0x5e] sm:$0xff] }
  0x45   : > { %v1637_v42 = vld [vmem:[%s4944_s22 + $0x46] sm:$0xff]  ;;  %v1638_v43 = vld [vmem:[%s4944_s22 + $0x4e] sm:$0xff]  ;;  %v3773_v51 = vld [vmem:[%s5426_s4 + $0x38] sm:$0xff] }
  0x46   : > { %4153 = vmatmul.mubr.msk.f32.vlgmr.msra.gmra.mrb[0].mxu0 %vm332_vm0, %v308_v22  ;;  %v1642_v22 = vld [vmem:[#allocation3 + $0x80] sm:$0xff]  ;;  %v3772_v50 = vld [vmem:[%s5426_s4 + $0x30] sm:$0xff] }
  0x47   : > { %4518 = vmatpush3.bf16.msra.mxu0 %v4515_v11  ;;  %4155 = vmatprep.mubr.msk.f32.mxu0 %vm332_vm0, %v309_v23  ;;  %v1475_v11 = vld [vmem:[#allocation3 + $0x78] sm:$0xff]  ;;  %v1643_v23 = vld [vmem:[#allocation3 + $0x88] sm:$0xff]  ;;  %v3771_v47 = vld [vmem:[%s5426_s4 + $0x28] sm:$0xff]  ;;  %v4547_v52 = vpack.c.bf16 %v3773_v51, %v3772_v50 }
  0x48   : > { %4520 = vmatprep.subr.bf16.mxu0 %v4519_v24  ;;  %v4535_v14 = vpack.c.bf16 %v1475_v11, %v1474_v10  ;;  %v1923_v55 = vld [vmem:[%s5426_s4 + $0x8] sm:$0xff] }
  0x4a   : > { %4156 = vmatmul.mubr.msk.f32.gmra.mrb[2].mxu0 %vm332_vm0, %v310_v25  ;;  %v1304_v25 = vld [vmem:[%s4944_s22 + $0x5c] sm:$0xff] }
  0x4b   : > { %4158 = vmatprep.mubr.msk.f32.mxu0 %vm332_vm0, %v311_v26  ;;  %v1463_v26 = vld [vmem:[%s4944_s22 + $0x15] sm:$0xff] }
  0x4e   : > { %4159 = vmatmul.mubr.msk.f32.gmra.mrb[4].mxu0 %vm332_vm0, %v312_v27  ;;  %v1464_v27 = vld [vmem:[%s4944_s22 + $0x1d] sm:$0xff] }
  0x4f   : > { %4161 = vmatprep.mubr.msk.f32.mxu0 %vm332_vm0, %v313_v28  ;;  %v1465_v28 = vld [vmem:[%s4944_s22 + $0x25] sm:$0xff] }
  0x52   : > { %4162 = vmatmul.mubr.msk.f32.gmra.mrb[6].mxu0 %vm332_vm0, %v314_v29  ;;  %v1466_v29 = vld [vmem:[%s4944_s22 + $0x2d] sm:$0xff] }
  0x53   : > { %4164 = vmatprep.mubr.msk.f32.mxu0 %vm332_vm0, %v315_v30  ;;  %v1467_v30 = vld [vmem:[%s4944_s22 + $0x35] sm:$0xff] }
  0x56   : > { %4165 = vmatmul.mubr.msk.f32.gmra.mrb[8].mxu0 %vm332_vm0, %v316_v31  ;;  %v1468_v31 = vld [vmem:[%s4944_s22 + $0x3d] sm:$0xff] }
  0x57   : > { %4171 = vmatprep.mubr.msk.f32.mxu0 %vm332_vm0, %v623_v32  ;;  %v1469_v32 = vld [vmem:[%s4944_s22 + $0x45] sm:$0xff] }
  0x5a   : > { %4172 = vmatmul.mubr.msk.f32.vlgmr.msra.gmra.mrb[0].mxu0 %vm332_vm0, %v624_v35 }
  0x5b   : > { %4522 = vmatpush3.bf16.msra.mxu0 %v4519_v24  ;;  %4174 = vmatprep.mubr.msk.f32.mxu0 %vm332_vm0, %v625_v36  ;;  %v4539_v24 = vpack.c.bf16 %v1643_v23, %v1642_v22  ;;  %v1925_v22 = vld [vmem:[%s5426_s4 + $0x18] sm:$0xff] }
  0x5c   : > { %4524 = vmatprep.subr.bf16.mxu0 %v4523_v37 }
  0x5e   : > { %4175 = vmatmul.mubr.msk.f32.gmra.mrb[2].mxu0 %vm332_vm0, %v626_v38 }
  0x5f   : > { %4177 = vmatprep.mubr.msk.f32.mxu0 %vm332_vm0, %v627_v39 }
  0x62   : > { %4178 = vmatmul.mubr.msk.f32.gmra.mrb[4].mxu0 %vm332_vm0, %v628_v40 }
  0x63   : > { %4180 = vmatprep.mubr.msk.f32.mxu0 %vm332_vm0, %v629_v41 }
  0x66   : > { %4181 = vmatmul.mubr.msk.f32.gmra.mrb[6].mxu0 %vm332_vm0, %v630_v44 }
  0x67   : > { %4183 = vmatprep.mubr.msk.f32.mxu0 %vm332_vm0, %v631_v46 }
  0x6a   : > { %4184 = vmatmul.mubr.msk.f32.gmra.mrb[8].mxu0 %vm332_vm0, %v632_v49 }
  0x6b   : > { %4190 = vmatprep.mubr.msk.f32.mxu0 %vm332_vm0, %v624_v35  ;;  %v1472_v35 = vld [vmem:[%s4944_s22 + $0x5d] sm:$0xff] }
  0x6e   : > { %4191 = vmatmul.mubr.msk.f32.vlgmr.msra.gmra.mrb[0].mxu0 %vm332_vm0, %v625_v36  ;;  %v1631_v36 = vld [vmem:[%s4944_s22 + $0x16] sm:$0xff] }
  0x6f   : > { %4526 = vmatpush3.bf16.msra.mxu0 %v4523_v37  ;;  %4193 = vmatprep.mubr.msk.f32.mxu0 %vm332_vm0, %v626_v38  ;;  %v1632_v37 = vld [vmem:[%s4944_s22 + $0x1e] sm:$0xff]  ;;  %v1633_v38 = vld [vmem:[%s4944_s22 + $0x26] sm:$0xff] }
  0x70   : > { %4528 = vmatprep.subr.bf16.mxu0 %v4527_v54 }
  0x72   : > { %4194 = vmatmul.mubr.msk.f32.gmra.mrb[2].mxu0 %vm332_vm0, %v627_v39  ;;  %v1634_v39 = vld [vmem:[%s4944_s22 + $0x2e] sm:$0xff] }
  0x73   : > { %4196 = vmatprep.mubr.msk.f32.mxu0 %vm332_vm0, %v628_v40  ;;  %v1635_v40 = vld [vmem:[%s4944_s22 + $0x36] sm:$0xff] }
  0x76   : > { %4197 = vmatmul.mubr.msk.f32.gmra.mrb[4].mxu0 %vm332_vm0, %v629_v41  ;;  %v1636_v41 = vld [vmem:[%s4944_s22 + $0x3e] sm:$0xff] }
  0x77   : > { %4199 = vmatprep.mubr.msk.f32.mxu0 %vm332_vm0, %v630_v44  ;;  %v1639_v44 = vld [vmem:[%s4944_s22 + $0x56] sm:$0xff] }
  0x7a   : > { %4200 = vmatmul.mubr.msk.f32.gmra.mrb[6].mxu0 %vm332_vm0, %v631_v46  ;;  %v3770_v46 = vld [vmem:[%s5426_s4 + $0x20] sm:$0xff] }
  0x7b   : > { %4202 = vmatprep.mubr.msk.f32.mxu0 %vm332_vm0, %v632_v49  ;;  %v4543_v48 = vpack.c.bf16 %v3771_v47, %v3770_v46  ;;  %v4848_v49 = vmov 0.0  }
  0x7c   : > { %1897 = vst.msk [vmem:[#allocation2] sm:$0xff] %vm1896_vm1, %v4848_v49  ;;  %1900 = vst.msk [vmem:[#allocation2 + $0x5b] sm:$0xff] %vm1896_vm1, %v4848_v49 }
  0x7d   : > { %1899 = vst.msk [vmem:[#allocation2 + $0x8] sm:$0x7] %vm1898_vm2, %v4848_v49  ;;  %1901 = vst.msk [vmem:[#allocation2 + $0x63] sm:$0x7] %vm1898_vm2, %v4848_v49  ;;  %4544 = vmatprep.subr.bf16.mxu1 %v4543_v48 }
  0x7e   : > { %4203 = vmatmul.mubr.msk.f32.gmra.mrb[8].mxu0 %vm332_vm0, %v800_v59  ;;  %4546 = vmatpush3.bf16.msra.mxu1 %v4543_v48  ;;  %v3769_v59 = vld [vmem:[%s5425_s3] ss:$0 sm:$0xff] }
  0x7f   : > { %4209 = vmatprep.mubr.msk.f32.mxu0 %vm332_vm0, %v959_v60  ;;  %4548 = vmatprep.subr.bf16.mxu1 %v4547_v52 }
  0x82   : > { %4210 = vmatmul.mubr.msk.f32.vlgmr.msra.gmra.mrb[0].mxu0 %vm332_vm0, %v960_v63  ;;  %4550 = vmatpush3.bf16.msra.mxu1 %v4547_v52 }
  0x83   : > { %4530 = vmatpush3.bf16.msra.mxu0 %v4527_v54  ;;  %4212 = vmatprep.mubr.msk.f32.mxu0 %vm332_vm0, %v961_v0  ;;  %v1922_v54 = vld [vmem:[%s5426_s4] sm:$0xff] }
  0x84   : > { %4532 = vmatprep.subr.bf16.mxu0 %v4531_v1  ;;  %v1926_v53 = vld [vmem:[#allocation2 + $0x1] sm:$0xff]  ;;  %v4551_v56 = vpack.c.bf16 %v1923_v55, %v1922_v54 }
  0x85   : > { %4308 = vmatprep.mubr.msk.f32.mxu1 %vm1896_vm1, %v1926_v53 }
  0x86   : > { %4213 = vmatmul.mubr.msk.f32.gmra.mrb[2].mxu0 %vm332_vm0, %v962_v2  ;;  %4552 = vmatprep.subr.bf16.mxu1 %v4551_v56 }
  0x87   : > { %4215 = vmatprep.mubr.msk.f32.mxu0 %vm332_vm0, %v963_v3 }
  0x8a   : > { %4216 = vmatmul.mubr.msk.f32.gmra.mrb[4].mxu0 %vm332_vm0, %v964_v4 }
  0x8b   : > { %4218 = vmatprep.mubr.msk.f32.mxu0 %vm332_vm0, %v965_v5 }
  0x8e   : > { %4219 = vmatmul.mubr.msk.f32.gmra.mrb[6].mxu0 %vm332_vm0, %v966_v6 }
  0x8f   : > { %4221 = vmatprep.mubr.msk.f32.mxu0 %vm332_vm0, %v967_v7 }
  0x92   : > { %4222 = vmatmul.mubr.msk.f32.gmra.mrb[8].mxu0 %vm332_vm0, %v968_v8 }
  0x93   : > { %4228 = vmatprep.mubr.msk.f32.mxu0 %vm332_vm0, %v1127_v9 }
  0x96   : > { %4229 = vmatmul.mubr.msk.f32.vlgmr.msra.gmra.mrb[0].mxu0 %vm332_vm0, %v1128_v12 }
  0x97   : > { %4534 = vmatpush3.bf16.msra.mxu0 %v4531_v1  ;;  %4231 = vmatprep.mubr.msk.f32.mxu0 %vm332_vm0, %v1129_v13 }
  0x98   : > { %4536 = vmatprep.subr.bf16.mxu0 %v4535_v14 }
  0x9a   : > { %4232 = vmatmul.mubr.msk.f32.gmra.mrb[2].mxu0 %vm332_vm0, %v1130_v15 }
  0x9b   : > { %4234 = vmatprep.mubr.msk.f32.mxu0 %vm332_vm0, %v1131_v16 }
  0x9e   : > { %4235 = vmatmul.mubr.msk.f32.gmra.mrb[4].mxu0 %vm332_vm0, %v1132_v17 }
  0x9f   : > { %4237 = vmatprep.mubr.msk.f32.mxu0 %vm332_vm0, %v1133_v18 }
  0xa2   : > { %4238 = vmatmul.mubr.msk.f32.gmra.mrb[6].mxu0 %vm332_vm0, %v1134_v19 }
  0xa3   : > { %4240 = vmatprep.mubr.msk.f32.mxu0 %vm332_vm0, %v1135_v20 }
  0xa6   : > { %4241 = vmatmul.mubr.msk.f32.gmra.mrb[8].mxu0 %vm332_vm0, %v1136_v21 }
  0xa7   : > { %4247 = vmatprep.mubr.msk.f32.mxu0 %vm332_vm0, %v1128_v12 }
  0xaa   : > { %4248 = vmatmul.mubr.msk.f32.vlgmr.msra.gmra.mrb[0].mxu0 %vm332_vm0, %v1129_v13 }
  0xab   : > { %4538 = vmatpush3.bf16.msra.mxu0 %v4535_v14  ;;  %4250 = vmatprep.mubr.msk.f32.mxu0 %vm332_vm0, %v1130_v15 }
  0xac   : > { %4540 = vmatprep.subr.bf16.mxu0 %v4539_v24 }
  0xad   : > { %v1839_v58 = vpop.permute.xlu0 %1838 }
  0xae   : > { %4251 = vmatmul.mubr.msk.f32.gmra.mrb[2].mxu0 %vm332_vm0, %v1131_v16  ;;  %v1849_v57 = vpop.permute.xlu1 %1848 }
  0xaf   : > { %4253 = vmatprep.mubr.msk.f32.mxu0 %vm332_vm0, %v1132_v17 }
  0xb1   : > { %v1844_v1 = vpop.permute.xlu0 %1843 }
  0xb2   : > { %4254 = vmatmul.mubr.msk.f32.gmra.mrb[4].mxu0 %vm332_vm0, %v1133_v18 }
  0xb3   : > { %4256 = vmatprep.mubr.msk.f32.mxu0 %vm332_vm0, %v1134_v19  ;;  %v1854_v63 = vpop.permute.xlu1 %1853 }
  0xb6   : > { %4257 = vmatmul.mubr.msk.f32.gmra.mrb[6].mxu0 %vm332_vm0, %v1135_v20 }
  0xb7   : > { %4259 = vmatprep.mubr.msk.f32.mxu0 %vm332_vm0, %v1136_v21  ;;  %v1864_v11 = vpop.permute.xlu1 %1863  ;;  %v1924_v21 = vld [vmem:[%s5426_s4 + $0x10] sm:$0xff] }
  0xba   : > { %4260 = vmatmul.mubr.msk.f32.gmra.mrb[8].mxu0 %vm332_vm0, %v1304_v25  ;;  %v1859_v14 = vpop.permute.xlu0 %1858 }
  0xbb   : > { %4266 = vmatprep.mubr.msk.f32.mxu0 %vm332_vm0, %v1463_v26 }
  0xbe   : > { %4267 = vmatmul.mubr.msk.f32.vlgmr.msra.gmra.mrb[0].mxu0 %vm332_vm0, %v1464_v27 }
  0xbf   : > { %4542 = vmatpush3.bf16.msra.mxu0 %v4539_v24  ;;  %4269 = vmatprep.mubr.msk.f32.mxu0 %vm332_vm0, %v1465_v28  ;;  %v1874_v28 = vpop.permute.xlu1 %1873 }
  0xc2   : > { %4270 = vmatmul.mubr.msk.f32.gmra.mrb[2].mxu0 %vm332_vm0, %v1466_v29 }
  0xc3   : > { %4272 = vmatprep.mubr.msk.f32.mxu0 %vm332_vm0, %v1467_v30  ;;  %v1884_v49 = vpop.permute.xlu1 %1883 }
  0xc6   : > { %4273 = vmatmul.mubr.msk.f32.gmra.mrb[4].mxu0 %vm332_vm0, %v1468_v31  ;;  %v4555_v31 = vpack.c.bf16 %v1925_v22, %v1924_v21 }
  0xc7   : > { %4275 = vmatprep.mubr.msk.f32.mxu0 %vm332_vm0, %v1469_v32  ;;  %v3794_v32 = vld [vmem:[%s5426_s4 + $0x40] sm:$0xff] }
  0xca   : > { %4276 = vmatmul.mubr.msk.f32.gmra.mrb[6].mxu0 %vm332_vm0, %v1470_v33  ;;  %v1869_v33 = vpop.permute.xlu0 %1868 }
  0xcb   : > { %4278 = vmatprep.mubr.msk.f32.mxu0 %vm332_vm0, %v1471_v34 }
  0xce   : > { %4279 = vmatmul.mubr.msk.f32.gmra.mrb[8].mxu0 %vm332_vm0, %v1472_v35  ;;  %v1879_v51 = vpop.permute.xlu0 %1878 }
  0xcf   : > { %4285 = vmatprep.mubr.msk.f32.mxu0 %vm332_vm0, %v1631_v36 }
  0xd2   : > { %4286 = vmatmul.mubr.msk.f32.vlgmr.msra.gmra.mrb[0].mxu0 %vm332_vm0, %v1632_v37  ;;  %v3795_v37 = vld [vmem:[%s5426_s4 + $0x48] sm:$0xff] }
  0xd3   : > { %4288 = vmatprep.mubr.msk.f32.mxu0 %vm332_vm0, %v1633_v38 }
  0xd6   : > { %4289 = vmatmul.mubr.msk.f32.gmra.mrb[2].mxu0 %vm332_vm0, %v1634_v39 }
  0xd7   : > { %4291 = vmatprep.mubr.msk.f32.mxu0 %vm332_vm0, %v1635_v40 }
  0xda   : > { %4292 = vmatmul.mubr.msk.f32.gmra.mrb[4].mxu0 %vm332_vm0, %v1636_v41 }
  0xdb   : > { %4294 = vmatprep.mubr.msk.f32.mxu0 %vm332_vm0, %v1637_v42 }
  0xde   : > { %4295 = vmatmul.mubr.msk.f32.gmra.mrb[6].mxu0 %vm332_vm0, %v1638_v43 }
  0xdf   : > { %4297 = vmatprep.mubr.msk.f32.mxu0 %vm332_vm0, %v1639_v44 }
  0xe2   : > { %4298 = vmatmul.mubr.msk.f32.gmra.mrb[8].mxu0 %vm332_vm0, %v1640_v45  ;;  %v4559_v45 = vpack.c.bf16 %v3795_v37, %v3794_v32 }
 0x1a5   : > { %v4287_v60 = vpop.f32.mrb[0].mxu0 }
 0x1a6   : > { %v1807_v61 = vadd.f32 %v4287_v60, %v3769_v59  ;;  %v1740_v62 = vpop.f32.mrb[1].mxu0  ;;  %v3796_v60 = vld [vmem:[%s5426_s4 + $0x50] sm:$0xff] }
 0x1a7   : > { %v1806_v0 = vadd.f32 %v3769_v59, %v1740_v62 }
 0x1a8   : > { %v1817_v2 = vmax.f32 %v1807_v61, 0.0  ;;  %v3797_v61 = vld [vmem:[%s5426_s4 + $0x58] sm:$0xff] }
 0x1a9   : > { %v1816_v3 = vmax.f32 %v1806_v0, 0.0  ;;  %v4290_v4 = vpop.f32.mrb[2].mxu0  ;;  %v4563_v62 = vpack.c.bf16 %v3797_v61, %v3796_v60  ;;  %v3808_v0 = vld [vmem:[%s5426_s4 + $0x60] sm:$0xff] }
 0x1aa   : > { %v1887_v5 = vmul.f32 %v1844_v1, %v1817_v2  ;;  %v1809_v6 = vadd.f32 %v4290_v4, %v3769_v59  ;;  %v1750_v7 = vpop.f32.mrb[3].mxu0  ;;  %v3809_v1 = vld [vmem:[%s5426_s4 + $0x68] sm:$0xff] }
 0x1ab   : > { %v1886_v8 = vmul.f32 %v1839_v58, %v1816_v3  ;;  %v1808_v9 = vadd.f32 %v3769_v59, %v1750_v7  ;;  %v1912_v58 = vld [vmem:[#allocation2] sm:$0xff]  ;;  %v4567_v3 = vpack.c.bf16 %v3809_v1, %v3808_v0 }
 0x1ac   : > { %1903 = vst.msk [vmem:[#allocation2 + $0x13] sm:$0xff] %vm1896_vm1, %v1887_v5  ;;  %v1819_v10 = vmax.f32 %v1809_v6, 0.0 }
 0x1ad   : > { %1902 = vst.msk [vmem:[#allocation2 + $0xb] sm:$0xff] %vm1896_vm1, %v1886_v8  ;;  %v1818_v12 = vmax.f32 %v1808_v9, 0.0  ;;  %v4293_v13 = vpop.f32.mrb[4].mxu0 }
 0x1ae   : > { %v1889_v15 = vmul.f32 %v1854_v63, %v1819_v10  ;;  %v1811_v16 = vadd.f32 %v4293_v13, %v3769_v59  ;;  %v1760_v17 = vpop.f32.mrb[5].mxu0  ;;  %v2231_v10 = vld [vmem:[#allocation2 + $0x2] sm:$0xff]  ;;  %v3811_v13 = vld [vmem:[%s5426_s4 + $0x78] sm:$0xff] }
 0x1af   : > { %v1888_v18 = vmul.f32 %v1849_v57, %v1818_v12  ;;  %v1810_v19 = vadd.f32 %v3769_v59, %v1760_v17  ;;  %v3810_v12 = vld [vmem:[%s5426_s4 + $0x70] sm:$0xff]  ;;  %v3823_v17 = vld [vmem:[%s5426_s4 + $0x88] sm:$0xff] }
 0x1b0   : > { %1905 = vst.msk [vmem:[#allocation2 + $0x23] sm:$0xff] %vm1896_vm1, %v1889_v15  ;;  %v1821_v20 = vmax.f32 %v1811_v16, 0.0  ;;  %v3822_v16 = vld [vmem:[%s5426_s4 + $0x80] sm:$0xff] }
 0x1b1   : > { %1904 = vst.msk [vmem:[#allocation2 + $0x1b] sm:$0xff] %vm1896_vm1, %v1888_v18  ;;  %v1820_v23 = vmax.f32 %v1810_v19, 0.0  ;;  %v4296_v24 = vpop.f32.mrb[6].mxu0  ;;  %v4575_v19 = vpack.c.bf16 %v3823_v17, %v3822_v16 }
 0x1b2   : > { %v1891_v25 = vmul.f32 %v1864_v11, %v1821_v20  ;;  %v1813_v26 = vadd.f32 %v4296_v24, %v3769_v59  ;;  %v1770_v27 = vpop.f32.mrb[7].mxu0 }
 0x1b3   : > { %v1890_v29 = vmul.f32 %v1859_v14, %v1820_v23  ;;  %v1812_v30 = vadd.f32 %v3769_v59, %v1770_v27  ;;  %v4571_v14 = vpack.c.bf16 %v3811_v13, %v3810_v12  ;;  %v3824_v27 = vld [vmem:[%s5426_s4 + $0x90] sm:$0xff] }
 0x1b4   : > { %1907 = vst.msk [vmem:[#allocation2 + $0x33] sm:$0xff] %vm1896_vm1, %v1891_v25  ;;  %v1823_v34 = vmax.f32 %v1813_v26, 0.0  ;;  %v1927_v35 = vld [vmem:[#allocation2 + $0x9] sm:$0xff]  ;;  %v1928_v36 = vld [vmem:[#allocation2 + $0x11] sm:$0xff] }
 0x1b5   : > { %1906 = vst.msk [vmem:[#allocation2 + $0x2b] sm:$0xff] %vm1896_vm1, %v1890_v29  ;;  %v1822_v38 = vmax.f32 %v1812_v30, 0.0  ;;  %v4299_v39 = vpop.f32.mrb[8].mxu0  ;;  %4309 = vmatmul.mubr.msk.f32.vlgmr.msra.gmra.mrb[0].mxu1 %vm1896_vm1, %v1927_v35  ;;  %v1913_v63 = vld [vmem:[#allocation2 + $0x8] sm:$0xff]  ;;  %v1914_v2 = vld [vmem:[#allocation2 + $0x10] sm:$0xff]  ;;  %v3836_v30 = vld [vmem:[%s5426_s4 + $0xa0] sm:$0xff] }
 0x1b6   : > { %v1893_v40 = vmul.f32 %v1874_v28, %v1823_v34  ;;  %v1815_v41 = vadd.f32 %v4299_v39, %v3769_v59  ;;  %v1780_v42 = vpop.f32.mrb[9].mxu0  ;;  %4311 = vmatprep.mubr.msk.f32.mxu1 %vm1896_vm1, %v1928_v36  ;;  %4554 = vmatpush3.bf16.msra.mxu1 %v4551_v56  ;;  %v2232_v15 = vld [vmem:[#allocation2 + $0xa] sm:$0xff]  ;;  %v2233_v18 = vld [vmem:[#allocation2 + $0x12] sm:$0xff]  ;;  %v3850_v39 = vld [vmem:[%s5426_s4 + $0xc0] sm:$0xff] }
 0x1b7   : > { %v1892_v43 = vmul.f32 %v1869_v33, %v1822_v38  ;;  %v1814_v44 = vadd.f32 %v3769_v59, %v1780_v42  ;;  %4556 = vmatprep.subr.bf16.mxu1 %v4555_v31  ;;  %v3825_v28 = vld [vmem:[%s5426_s4 + $0x98] sm:$0xff]  ;;  %v3838_v34 = vld [vmem:[%s5426_s4 + $0xb0] sm:$0xff] }
 0x1b8   : > { %1909 = vst.msk [vmem:[#allocation2 + $0x43] sm:$0xff] %vm1896_vm1, %v1893_v40  ;;  %v1825_v46 = vmax.f32 %v1815_v41, 0.0  ;;  %v1929_v47 = vld [vmem:[#allocation2 + $0x19] sm:$0xff]  ;;  %v1930_v48 = vld [vmem:[#allocation2 + $0x21] sm:$0xff]  ;;  %v4579_v29 = vpack.c.bf16 %v3825_v28, %v3824_v27  ;;  %v2571_v36 = vld [vmem:[#allocation2 + $0xb] sm:$0xff] }
 0x1b9   : > { %1908 = vst.msk [vmem:[#allocation2 + $0x3b] sm:$0xff] %vm1896_vm1, %v1892_v43  ;;  %v1824_v50 = vmax.f32 %v1814_v44, 0.0  ;;  %4312 = vmatmul.mubr.msk.f32.gmra.mrb[2].mxu1 %vm1896_vm1, %v1929_v47  ;;  %v1915_v4 = vld [vmem:[#allocation2 + $0x18] sm:$0xff]  ;;  %v1916_v5 = vld [vmem:[#allocation2 + $0x20] sm:$0xff]  ;;  %v3851_v40 = vld [vmem:[%s5426_s4 + $0xc8] sm:$0xff] }
 0x1ba   : > { %v1895_v52 = vmul.f32 %v1884_v49, %v1825_v46  ;;  %4314 = vmatprep.mubr.msk.f32.mxu1 %vm1896_vm1, %v1930_v48  ;;  %4558 = vmatpush3.bf16.msra.mxu1 %v4555_v31  ;;  %v2234_v20 = vld [vmem:[#allocation2 + $0x1a] sm:$0xff]  ;;  %v2235_v21 = vld [vmem:[#allocation2 + $0x22] sm:$0xff]  ;;  %v4591_v42 = vpack.c.bf16 %v3851_v40, %v3850_v39 }
 0x1bb   : > { %v1894_v53 = vmul.f32 %v1879_v51, %v1824_v50  ;;  %4560 = vmatprep.subr.bf16.mxu1 %v4559_v45  ;;  %v3837_v31 = vld [vmem:[%s5426_s4 + $0xa8] sm:$0xff]  ;;  %v3839_v35 = vld [vmem:[%s5426_s4 + $0xb8] sm:$0xff]  ;;  %v3852_v50 = vld [vmem:[%s5426_s4 + $0xd0] sm:$0xff] }
 0x1bc   : > { %1911 = vst.msk [vmem:[#allocation2 + $0x53] sm:$0xff] %vm1896_vm1, %v1895_v52  ;;  %v1931_v54 = vld [vmem:[#allocation2 + $0x29] sm:$0xff]  ;;  %v1932_v55 = vld [vmem:[#allocation2 + $0x31] sm:$0xff]  ;;  %v4583_v32 = vpack.c.bf16 %v3837_v31, %v3836_v30  ;;  %v4587_v37 = vpack.c.bf16 %v3839_v35, %v3838_v34  ;;  %v2573_v41 = vld [vmem:[#allocation2 + $0x1b] sm:$0xff] }
 0x1bd   : > { %1910 = vst.msk [vmem:[#allocation2 + $0x4b] sm:$0xff] %vm1896_vm1, %v1894_v53  ;;  %4315 = vmatmul.mubr.msk.f32.gmra.mrb[4].mxu1 %vm1896_vm1, %v1931_v54  ;;  %v1917_v6 = vld [vmem:[#allocation2 + $0x28] sm:$0xff]  ;;  %v1918_v7 = vld [vmem:[#allocation2 + $0x30] sm:$0xff]  ;;  %v3853_v51 = vld [vmem:[%s5426_s4 + $0xd8] sm:$0xff] }
 0x1be   : > { %4317 = vmatprep.mubr.msk.f32.mxu1 %vm1896_vm1, %v1932_v55  ;;  %v2236_v22 = vld [vmem:[#allocation2 + $0x2a] sm:$0xff]  ;;  %v2237_v23 = vld [vmem:[#allocation2 + $0x32] sm:$0xff]  ;;  %v4595_v53 = vpack.c.bf16 %v3853_v51, %v3852_v50  ;;  %v3864_v55 = vld [vmem:[%s5426_s4 + $0xe0] sm:$0xff] }
 0x1bf   : > { %v2572_v38 = vld [vmem:[#allocation2 + $0x13] sm:$0xff]  ;;  %v2574_v43 = vld [vmem:[#allocation2 + $0x23] sm:$0xff]  ;;  %v2575_v44 = vld [vmem:[#allocation2 + $0x2b] sm:$0xff] }
 0x1c0   : > { %v1933_v56 = vld [vmem:[#allocation2 + $0x39] sm:$0xff]  ;;  %v1934_v57 = vld [vmem:[#allocation2 + $0x41] sm:$0xff]  ;;  %v2741_v52 = vld [vmem:[#allocation2 + $0xc] sm:$0xff] }
 0x1c1   : > { %4318 = vmatmul.mubr.msk.f32.gmra.mrb[6].mxu1 %vm1896_vm1, %v1933_v56  ;;  %v1919_v8 = vld [vmem:[#allocation2 + $0x38] sm:$0xff]  ;;  %v1920_v9 = vld [vmem:[#allocation2 + $0x40] sm:$0xff]  ;;  %v3865_v56 = vld [vmem:[%s5426_s4 + $0xe8] sm:$0xff] }
 0x1c2   : > { %4320 = vmatprep.mubr.msk.f32.mxu1 %vm1896_vm1, %v1934_v57  ;;  %v2238_v24 = vld [vmem:[#allocation2 + $0x3a] sm:$0xff]  ;;  %v2239_v25 = vld [vmem:[#allocation2 + $0x42] sm:$0xff]  ;;  %v2745_v60 = vld [vmem:[#allocation2 + $0x2c] sm:$0xff] }
 0x1c3   : > { %v2577_v46 = vld [vmem:[#allocation2 + $0x3b] sm:$0xff]  ;;  %v2578_v47 = vld [vmem:[#allocation2 + $0x43] sm:$0xff]  ;;  %v2580_v49 = vld [vmem:[#allocation2 + $0x53] sm:$0xff] }
 0x1c4   : > { %v1935_v59 = vld [vmem:[#allocation2 + $0x49] sm:$0xff]  ;;  %v2410_v33 = vld [vmem:[#allocation2 + $0x52] sm:$0xff]  ;;  %v2743_v57 = vld [vmem:[#allocation2 + $0x1c] sm:$0xff] }
 0x1c5   : > { %4321 = vmatmul.mubr.msk.f32.gmra.mrb[8].mxu1 %vm1896_vm1, %v1935_v59  ;;  %v1921_v11 = vld [vmem:[#allocation2 + $0x48] sm:$0xff]  ;;  %v2742_v54 = vld [vmem:[#allocation2 + $0x14] sm:$0xff]  ;;  %v3082_v13 = vld [vmem:[#allocation2 + $0x1d] sm:$0xff] }
 0x1c6   : > { %4331 = vmatprep.mubr.msk.f32.mxu1 %vm1896_vm1, %v1912_v58  ;;  %v2240_v26 = vld [vmem:[#allocation2 + $0x4a] sm:$0xff]  ;;  %v4599_v58 = vpack.c.bf16 %v3865_v56, %v3864_v55  ;;  %v2746_v61 = vld [vmem:[#allocation2 + $0x34] sm:$0xff]  ;;  %v3086_v17 = vld [vmem:[#allocation2 + $0x3d] sm:$0xff] }
 0x1c7   : > { %v2579_v48 = vld [vmem:[#allocation2 + $0x4b] sm:$0xff]  ;;  %v2750_v1 = vld [vmem:[#allocation2 + $0x54] sm:$0xff]  ;;  %v3256_v27 = vld [vmem:[#allocation2 + $0x3e] sm:$0xff] }
 0x1c8   : > { %v2744_v59 = vld [vmem:[#allocation2 + $0x24] sm:$0xff]  ;;  %v2749_v0 = vld [vmem:[#allocation2 + $0x4c] sm:$0xff]  ;;  %v3085_v16 = vld [vmem:[#allocation2 + $0x35] sm:$0xff] }
 0x1c9   : > { %4332 = vmatmul.mubr.msk.f32.vlgmr.msra.gmra.mrb[0].mxu1 %vm1896_vm1, %v1913_v63  ;;  %v2748_v63 = vld [vmem:[#allocation2 + $0x44] sm:$0xff]  ;;  %v3259_v30 = vld [vmem:[#allocation2 + $0x56] sm:$0xff] }
 0x1ca   : > { %4334 = vmatprep.mubr.msk.f32.mxu1 %vm1896_vm1, %v1914_v2  ;;  %4562 = vmatpush3.bf16.msra.mxu1 %v4559_v45  ;;  %v2576_v45 = vld [vmem:[#allocation2 + $0x33] sm:$0xff]  ;;  %v3257_v28 = vld [vmem:[#allocation2 + $0x46] sm:$0xff]  ;;  %v3260_v31 = vld [vmem:[#allocation2 + $0x5e] sm:$0xff] }
 0x1cb   : > { %4564 = vmatprep.subr.bf16.mxu1 %v4563_v62  ;;  %v3866_v2 = vld [vmem:[%s5426_s4 + $0xf0] sm:$0xff] }
 0x1cd   : > { %4335 = vmatmul.mubr.msk.f32.gmra.mrb[2].mxu1 %vm1896_vm1, %v1915_v4 }
 0x1ce   : > { %4337 = vmatprep.mubr.msk.f32.mxu1 %vm1896_vm1, %v1916_v5  ;;  %4566 = vmatpush3.bf16.msra.mxu1 %v4563_v62  ;;  %v2747_v62 = vld [vmem:[#allocation2 + $0x3c] sm:$0xff] }
 0x1cf   : > { %4568 = vmatprep.subr.bf16.mxu1 %v4567_v3  ;;  %v3878_v5 = vld [vmem:[%s5426_s4 + $0x100] sm:$0xff] }
 0x1d1   : > { %4338 = vmatmul.mubr.msk.f32.gmra.mrb[4].mxu1 %vm1896_vm1, %v1917_v6  ;;  %v3879_v6 = vld [vmem:[%s5426_s4 + $0x108] sm:$0xff] }
 0x1d2   : > { %4340 = vmatprep.mubr.msk.f32.mxu1 %vm1896_vm1, %v1918_v7  ;;  %v4607_v7 = vpack.c.bf16 %v3879_v6, %v3878_v5 }
 0x1d5   : > { %4341 = vmatmul.mubr.msk.f32.gmra.mrb[6].mxu1 %vm1896_vm1, %v1919_v8  ;;  %v2920_v8 = vld [vmem:[#allocation2 + $0x5c] sm:$0xff] }
 0x1d6   : > { %4343 = vmatprep.mubr.msk.f32.mxu1 %vm1896_vm1, %v1920_v9  ;;  %v3880_v9 = vld [vmem:[%s5426_s4 + $0x110] sm:$0xff] }
 0x1d9   : > { %4344 = vmatmul.mubr.msk.f32.gmra.mrb[8].mxu1 %vm1896_vm1, %v1921_v11  ;;  %v3081_v11 = vld [vmem:[#allocation2 + $0x15] sm:$0xff] }
 0x1da   : > { %4354 = vmatprep.mubr.msk.f32.mxu1 %vm1896_vm1, %v2231_v10  ;;  %v3881_v10 = vld [vmem:[%s5426_s4 + $0x118] sm:$0xff] }
 0x1db   : > { %v4611_v12 = vpack.c.bf16 %v3881_v10, %v3880_v9 }
 0x1dd   : > { %4355 = vmatmul.mubr.msk.f32.vlgmr.msra.gmra.mrb[0].mxu1 %vm1896_vm1, %v2232_v15 }
 0x1de   : > { %4357 = vmatprep.mubr.msk.f32.mxu1 %vm1896_vm1, %v2233_v18  ;;  %4570 = vmatpush3.bf16.msra.mxu1 %v4567_v3  ;;  %v3867_v3 = vld [vmem:[%s5426_s4 + $0xf8] sm:$0xff] }
 0x1df   : > { %4572 = vmatprep.subr.bf16.mxu1 %v4571_v14  ;;  %v4603_v4 = vpack.c.bf16 %v3867_v3, %v3866_v2 }
 0x1e1   : > { %4358 = vmatmul.mubr.msk.f32.gmra.mrb[2].mxu1 %vm1896_vm1, %v2234_v20 }
 0x1e2   : > { %4360 = vmatprep.mubr.msk.f32.mxu1 %vm1896_vm1, %v2235_v21  ;;  %4574 = vmatpush3.bf16.msra.mxu1 %v4571_v14  ;;  %v3083_v14 = vld [vmem:[#allocation2 + $0x25] sm:$0xff] }
 0x1e3   : > { %4576 = vmatprep.subr.bf16.mxu1 %v4575_v19 }
 0x1e5   : > { %4361 = vmatmul.mubr.msk.f32.gmra.mrb[4].mxu1 %vm1896_vm1, %v2236_v22 }
 0x1e6   : > { %4363 = vmatprep.mubr.msk.f32.mxu1 %vm1896_vm1, %v2237_v23 }
 0x1e9   : > { %4364 = vmatmul.mubr.msk.f32.gmra.mrb[6].mxu1 %vm1896_vm1, %v2238_v24 }
 0x1ea   : > { %4366 = vmatprep.mubr.msk.f32.mxu1 %vm1896_vm1, %v2239_v25 }
 0x1ed   : > { %4367 = vmatmul.mubr.msk.f32.gmra.mrb[8].mxu1 %vm1896_vm1, %v2240_v26 }
 0x1ee   : > { %4377 = vmatprep.mubr.msk.f32.mxu1 %vm1896_vm1, %v2232_v15  ;;  %v3084_v15 = vld [vmem:[#allocation2 + $0x2d] sm:$0xff] }
 0x1f1   : > { %4378 = vmatmul.mubr.msk.f32.vlgmr.msra.gmra.mrb[0].mxu1 %vm1896_vm1, %v2233_v18  ;;  %v3087_v18 = vld [vmem:[#allocation2 + $0x45] sm:$0xff] }
 0x1f2   : > { %4380 = vmatprep.mubr.msk.f32.mxu1 %vm1896_vm1, %v2234_v20  ;;  %4578 = vmatpush3.bf16.msra.mxu1 %v4575_v19  ;;  %v3088_v19 = vld [vmem:[#allocation2 + $0x4d] sm:$0xff]  ;;  %v3089_v20 = vld [vmem:[#allocation2 + $0x55] sm:$0xff] }
 0x1f3   : > { %4580 = vmatprep.subr.bf16.mxu1 %v4579_v29 }
 0x1f5   : > { %4381 = vmatmul.mubr.msk.f32.gmra.mrb[2].mxu1 %vm1896_vm1, %v2235_v21  ;;  %v3090_v21 = vld [vmem:[#allocation2 + $0x5d] sm:$0xff] }
 0x1f6   : > { %4383 = vmatprep.mubr.msk.f32.mxu1 %vm1896_vm1, %v2236_v22  ;;  %4582 = vmatpush3.bf16.msra.mxu1 %v4579_v29  ;;  %v3251_v22 = vld [vmem:[#allocation2 + $0x16] sm:$0xff]  ;;  %v3258_v29 = vld [vmem:[#allocation2 + $0x4e] sm:$0xff] }
 0x1f7   : > { %4584 = vmatprep.subr.bf16.mxu1 %v4583_v32 }
 0x1f9   : > { %4384 = vmatmul.mubr.msk.f32.gmra.mrb[4].mxu1 %vm1896_vm1, %v2237_v23  ;;  %v3252_v23 = vld [vmem:[#allocation2 + $0x1e] sm:$0xff] }
 0x1fa   : > { %4386 = vmatprep.mubr.msk.f32.mxu1 %vm1896_vm1, %v2238_v24  ;;  %v3253_v24 = vld [vmem:[#allocation2 + $0x26] sm:$0xff] }
 0x1fd   : > { %4387 = vmatmul.mubr.msk.f32.gmra.mrb[6].mxu1 %vm1896_vm1, %v2239_v25  ;;  %v3254_v25 = vld [vmem:[#allocation2 + $0x2e] sm:$0xff] }
 0x1fe   : > { %4389 = vmatprep.mubr.msk.f32.mxu1 %vm1896_vm1, %v2240_v26  ;;  %v3255_v26 = vld [vmem:[#allocation2 + $0x36] sm:$0xff] }
 0x201   : > { %4390 = vmatmul.mubr.msk.f32.gmra.mrb[8].mxu1 %vm1896_vm1, %v2410_v33 }
 0x202   : > { %4400 = vmatprep.mubr.msk.f32.mxu1 %vm1896_vm1, %v2571_v36 }
 0x205   : > { %4401 = vmatmul.mubr.msk.f32.vlgmr.msra.gmra.mrb[0].mxu1 %vm1896_vm1, %v2572_v38 }
 0x206   : > { %4403 = vmatprep.mubr.msk.f32.mxu1 %vm1896_vm1, %v2573_v41  ;;  %4586 = vmatpush3.bf16.msra.mxu1 %v4583_v32  ;;  %v3892_v32 = vld [vmem:[%s5427_s5] ss:$0 sm:$0xff] }
 0x207   : > { %4588 = vmatprep.subr.bf16.mxu1 %v4587_v37 }
 0x209   : > { %4404 = vmatmul.mubr.msk.f32.gmra.mrb[2].mxu1 %vm1896_vm1, %v2574_v43 }
 0x20a   : > { %4406 = vmatprep.mubr.msk.f32.mxu1 %vm1896_vm1, %v2575_v44  ;;  %4590 = vmatpush3.bf16.msra.mxu1 %v4587_v37 }
 0x20b   : > { %4592 = vmatprep.subr.bf16.mxu1 %v4591_v42 }
 0x20d   : > { %4407 = vmatmul.mubr.msk.f32.gmra.mrb[4].mxu1 %vm1896_vm1, %v2576_v45 }
 0x20e   : > { %4409 = vmatprep.mubr.msk.f32.mxu1 %vm1896_vm1, %v2577_v46 }
 0x211   : > { %4410 = vmatmul.mubr.msk.f32.gmra.mrb[6].mxu1 %vm1896_vm1, %v2578_v47 }
 0x212   : > { %4412 = vmatprep.mubr.msk.f32.mxu1 %vm1896_vm1, %v2579_v48 }
 0x215   : > { %4413 = vmatmul.mubr.msk.f32.gmra.mrb[8].mxu1 %vm1896_vm1, %v2580_v49 }
 0x216   : > { %4423 = vmatprep.mubr.msk.f32.mxu1 %vm1896_vm1, %v2741_v52 }
 0x219   : > { %4424 = vmatmul.mubr.msk.f32.vlgmr.msra.gmra.mrb[0].mxu1 %vm1896_vm1, %v2742_v54 }
 0x21a   : > { %4426 = vmatprep.mubr.msk.f32.mxu1 %vm1896_vm1, %v2743_v57  ;;  %4594 = vmatpush3.bf16.msra.mxu1 %v4591_v42 }
 0x21b   : > { %4596 = vmatprep.subr.bf16.mxu1 %v4595_v53 }
 0x21d   : > { %4427 = vmatmul.mubr.msk.f32.gmra.mrb[2].mxu1 %vm1896_vm1, %v2744_v59 }
 0x21e   : > { %4429 = vmatprep.mubr.msk.f32.mxu1 %vm1896_vm1, %v2745_v60  ;;  %4598 = vmatpush3.bf16.msra.mxu1 %v4595_v53 }
 0x21f   : > { %4600 = vmatprep.subr.bf16.mxu1 %v4599_v58 }
 0x221   : > { %4430 = vmatmul.mubr.msk.f32.gmra.mrb[4].mxu1 %vm1896_vm1, %v2746_v61 }
 0x222   : > { %4432 = vmatprep.mubr.msk.f32.mxu1 %vm1896_vm1, %v2747_v62 }
 0x225   : > { %4433 = vmatmul.mubr.msk.f32.gmra.mrb[6].mxu1 %vm1896_vm1, %v2748_v63 }
 0x226   : > { %4435 = vmatprep.mubr.msk.f32.mxu1 %vm1896_vm1, %v2749_v0 }
 0x229   : > { %4436 = vmatmul.mubr.msk.f32.gmra.mrb[8].mxu1 %vm1896_vm1, %v2750_v1 }
 0x22a   : > { %4446 = vmatprep.mubr.msk.f32.mxu1 %vm1896_vm1, %v2742_v54 }
 0x22d   : > { %4447 = vmatmul.mubr.msk.f32.vlgmr.msra.gmra.mrb[0].mxu1 %vm1896_vm1, %v2743_v57 }
 0x22e   : > { %4449 = vmatprep.mubr.msk.f32.mxu1 %vm1896_vm1, %v2744_v59  ;;  %4602 = vmatpush3.bf16.msra.mxu1 %v4599_v58 }
 0x22f   : > { %4604 = vmatprep.subr.bf16.mxu1 %v4603_v4 }
 0x231   : > { %4450 = vmatmul.mubr.msk.f32.gmra.mrb[2].mxu1 %vm1896_vm1, %v2745_v60 }
 0x232   : > { %4452 = vmatprep.mubr.msk.f32.mxu1 %vm1896_vm1, %v2746_v61  ;;  %4606 = vmatpush3.bf16.msra.mxu1 %v4603_v4 }
 0x233   : > { %4608 = vmatprep.subr.bf16.mxu1 %v4607_v7 }
 0x235   : > { %4453 = vmatmul.mubr.msk.f32.gmra.mrb[4].mxu1 %vm1896_vm1, %v2747_v62 }
 0x236   : > { %4455 = vmatprep.mubr.msk.f32.mxu1 %vm1896_vm1, %v2748_v63 }
 0x239   : > { %4456 = vmatmul.mubr.msk.f32.gmra.mrb[6].mxu1 %vm1896_vm1, %v2749_v0 }
 0x23a   : > { %4458 = vmatprep.mubr.msk.f32.mxu1 %vm1896_vm1, %v2750_v1 }
 0x23d   : > { %4459 = vmatmul.mubr.msk.f32.gmra.mrb[8].mxu1 %vm1896_vm1, %v2920_v8 }
 0x23e   : > { %4469 = vmatprep.mubr.msk.f32.mxu1 %vm1896_vm1, %v3081_v11 }
 0x241   : > { %4470 = vmatmul.mubr.msk.f32.vlgmr.msra.gmra.mrb[0].mxu1 %vm1896_vm1, %v3082_v13 }
 0x242   : > { %4472 = vmatprep.mubr.msk.f32.mxu1 %vm1896_vm1, %v3083_v14  ;;  %4610 = vmatpush3.bf16.msra.mxu1 %v4607_v7 }
 0x243   : > { %4612 = vmatprep.subr.bf16.mxu1 %v4611_v12 }
 0x245   : > { %4473 = vmatmul.mubr.msk.f32.gmra.mrb[2].mxu1 %vm1896_vm1, %v3084_v15 }
 0x246   : > { %4475 = vmatprep.mubr.msk.f32.mxu1 %vm1896_vm1, %v3085_v16  ;;  %4614 = vmatpush3.bf16.msra.mxu1 %v4611_v12 }
 0x249   : > { %4476 = vmatmul.mubr.msk.f32.gmra.mrb[4].mxu1 %vm1896_vm1, %v3086_v17 }
 0x24a   : > { %4478 = vmatprep.mubr.msk.f32.mxu1 %vm1896_vm1, %v3087_v18 }
 0x24d   : > { %4479 = vmatmul.mubr.msk.f32.gmra.mrb[6].mxu1 %vm1896_vm1, %v3088_v19 }
 0x24e   : > { %4481 = vmatprep.mubr.msk.f32.mxu1 %vm1896_vm1, %v3089_v20 }
 0x251   : > { %4482 = vmatmul.mubr.msk.f32.gmra.mrb[8].mxu1 %vm1896_vm1, %v3090_v21 }
 0x252   : > { %4492 = vmatprep.mubr.msk.f32.mxu1 %vm1896_vm1, %v3251_v22 }
 0x255   : > { %4493 = vmatmul.mubr.msk.f32.vlgmr.msra.gmra.mrb[0].mxu1 %vm1896_vm1, %v3252_v23 }
 0x256   : > { %4495 = vmatprep.mubr.msk.f32.mxu1 %vm1896_vm1, %v3253_v24 }
 0x259   : > { %4496 = vmatmul.mubr.msk.f32.gmra.mrb[2].mxu1 %vm1896_vm1, %v3254_v25 }
 0x25a   : > { %4498 = vmatprep.mubr.msk.f32.mxu1 %vm1896_vm1, %v3255_v26 }
 0x25d   : > { %4499 = vmatmul.mubr.msk.f32.gmra.mrb[4].mxu1 %vm1896_vm1, %v3256_v27 }
 0x25e   : > { %4501 = vmatprep.mubr.msk.f32.mxu1 %vm1896_vm1, %v3257_v28 }
 0x261   : > { %4502 = vmatmul.mubr.msk.f32.gmra.mrb[6].mxu1 %vm1896_vm1, %v3258_v29 }
 0x262   : > { %4504 = vmatprep.mubr.msk.f32.mxu1 %vm1896_vm1, %v3259_v30 }
 0x265   : > { %4505 = vmatmul.mubr.msk.f32.gmra.mrb[8].mxu1 %vm1896_vm1, %v3260_v31 }
 0x328   : > { %v4494_v33 = vpop.f32.mrb[0].mxu1 }
 0x329   : > { %v3429_v34 = vadd.f32 %v4494_v33, %v3892_v32  ;;  %v3362_v35 = vpop.f32.mrb[1].mxu1 }
 0x32a   : > { %v3428_v36 = vadd.f32 %v3892_v32, %v3362_v35 }
 0x32b   : > { %v3439_v37 = vmax.f32 %v3429_v34, 0.0 }
 0x32c   : > { %v3438_v38 = vmax.f32 %v3428_v36, 0.0  ;;  %v4497_v39 = vpop.f32.mrb[2].mxu1 }
 0x32d   : > { %3449 = vst.msk [vmem:[%s5360_s17 + $0x8] sm:$0xff] %vm1896_vm1, %v3439_v37  ;;  %v3431_v40 = vadd.f32 %v4497_v39, %v3892_v32  ;;  %3470 = vrot.lane.b32.xlu1 %v3439_v37, %s4849_s18  ;;  %v3372_v41 = vpop.f32.mrb[3].mxu1 }
 0x32e   : > { %3448 = vst.msk [vmem:[%s5360_s17] sm:$0xff] %vm1896_vm1, %v3438_v38  ;;  %v3430_v42 = vadd.f32 %v3892_v32, %v3372_v41  ;;  %3468 = vrot.lane.b32.xlu0 %v3438_v38, %s4849_s18 }
 0x32f   : > { %v3441_v43 = vmax.f32 %v3431_v40, 0.0 }
 0x330   : > { %v3440_v44 = vmax.f32 %v3430_v42, 0.0  ;;  %v4500_v45 = vpop.f32.mrb[4].mxu1 }
 0x331   : > { %3451 = vst.msk [vmem:[%s5360_s17 + $0x18] sm:$0xff] %vm1896_vm1, %v3441_v43  ;;  %v3433_v46 = vadd.f32 %v4500_v45, %v3892_v32  ;;  %3474 = vrot.lane.b32.xlu1 %v3441_v43, %s4849_s18  ;;  %v3382_v47 = vpop.f32.mrb[5].mxu1 }
 0x332   : > { %3450 = vst.msk [vmem:[%s5360_s17 + $0x10] sm:$0xff] %vm1896_vm1, %v3440_v44  ;;  %v3432_v48 = vadd.f32 %v3892_v32, %v3382_v47  ;;  %3472 = vrot.lane.b32.xlu0 %v3440_v44, %s4849_s18 }
 0x333   : > { %v3443_v49 = vmax.f32 %v3433_v46, 0.0 }
 0x334   : > { %v3442_v50 = vmax.f32 %v3432_v48, 0.0  ;;  %v4503_v51 = vpop.f32.mrb[6].mxu1 }
 0x335   : > { %3453 = vst.msk [vmem:[%s5360_s17 + $0x28] sm:$0xff] %vm1896_vm1, %v3443_v49  ;;  %v3435_v52 = vadd.f32 %v4503_v51, %v3892_v32  ;;  %3478 = vrot.lane.b32.xlu1 %v3443_v49, %s4849_s18  ;;  %v3392_v53 = vpop.f32.mrb[7].mxu1 }
 0x336   : > { %3452 = vst.msk [vmem:[%s5360_s17 + $0x20] sm:$0xff] %vm1896_vm1, %v3442_v50  ;;  %v3434_v54 = vadd.f32 %v3892_v32, %v3392_v53  ;;  %3476 = vrot.lane.b32.xlu0 %v3442_v50, %s4849_s18 }
 0x337   : > { %v3445_v55 = vmax.f32 %v3435_v52, 0.0 }
 0x338   : > { %v3444_v56 = vmax.f32 %v3434_v54, 0.0  ;;  %v4506_v57 = vpop.f32.mrb[8].mxu1 }
 0x339   : > { %3455 = vst.msk [vmem:[%s5360_s17 + $0x38] sm:$0xff] %vm1896_vm1, %v3445_v55  ;;  %v3437_v58 = vadd.f32 %v4506_v57, %v3892_v32  ;;  %3482 = vrot.lane.b32.xlu1 %v3445_v55, %s4849_s18  ;;  %v3402_v59 = vpop.f32.mrb[9].mxu1 }
 0x33a   : > { %3454 = vst.msk [vmem:[%s5360_s17 + $0x30] sm:$0xff] %vm1896_vm1, %v3444_v56  ;;  %v3436_v60 = vadd.f32 %v3892_v32, %v3402_v59  ;;  %3480 = vrot.lane.b32.xlu0 %v3444_v56, %s4849_s18 }
 0x33b   : > { %v3447_v61 = vmax.f32 %v3437_v58, 0.0 }
 0x33c   : > { %v3446_v62 = vmax.f32 %v3436_v60, 0.0 }
 0x33d   : > { %3457 = vst.msk [vmem:[%s5360_s17 + $0x48] sm:$0xff] %vm1896_vm1, %v3447_v61  ;;  %3486 = vrot.lane.b32.xlu1 %v3447_v61, %s4849_s18 }
 0x33e   : > { %3456 = vst.msk [vmem:[%s5360_s17 + $0x40] sm:$0xff] %vm1896_vm1, %v3446_v62  ;;  %3484 = vrot.lane.b32.xlu0 %v3446_v62, %s4849_s18 }
 0x39f   : > { %v3471_v63 = vpop.permute.xlu1 %3470 }
 0x3a0   : > { %v3499_v0 = vmax.f32 %v3439_v37, %v3471_v63  ;;  %v3469_v1 = vpop.permute.xlu0 %3468 }
 0x3a1   : > { %v3498_v2 = vmax.f32 %v3438_v38, %v3469_v1 }
 0x3a2   : > { %3520 = vrot.lane.b32.xlu1 %v3499_v0, %s4850_s19 }
 0x3a3   : > { %v3475_v3 = vpop.permute.xlu1 %3474  ;;  %3518 = vrot.lane.b32.xlu0 %v3498_v2, %s4850_s19 }
 0x3a4   : > { %v3501_v4 = vmax.f32 %v3441_v43, %v3475_v3  ;;  %v3473_v5 = vpop.permute.xlu0 %3472 }
 0x3a5   : > { %v3500_v6 = vmax.f32 %v3440_v44, %v3473_v5 }
 0x3a6   : > { %3524 = vrot.lane.b32.xlu1 %v3501_v4, %s4850_s19 }
 0x3a7   : > { %v3479_v7 = vpop.permute.xlu1 %3478  ;;  %3522 = vrot.lane.b32.xlu0 %v3500_v6, %s4850_s19 }
 0x3a8   : > { %v3503_v8 = vmax.f32 %v3443_v49, %v3479_v7  ;;  %v3477_v9 = vpop.permute.xlu0 %3476 }
 0x3a9   : > { %v3502_v10 = vmax.f32 %v3442_v50, %v3477_v9 }
 0x3aa   : > { %3528 = vrot.lane.b32.xlu1 %v3503_v8, %s4850_s19 }
 0x3ab   : > { %v3483_v11 = vpop.permute.xlu1 %3482  ;;  %3526 = vrot.lane.b32.xlu0 %v3502_v10, %s4850_s19 }
 0x3ac   : > { %v3505_v12 = vmax.f32 %v3445_v55, %v3483_v11  ;;  %v3481_v13 = vpop.permute.xlu0 %3480 }
 0x3ad   : > { %v3504_v14 = vmax.f32 %v3444_v56, %v3481_v13 }
 0x3ae   : > { %3532 = vrot.lane.b32.xlu1 %v3505_v12, %s4850_s19 }
 0x3af   : > { %v3487_v15 = vpop.permute.xlu1 %3486  ;;  %3530 = vrot.lane.b32.xlu0 %v3504_v14, %s4850_s19 }
 0x3b0   : > { %v3507_v16 = vmax.f32 %v3447_v61, %v3487_v15  ;;  %v3485_v17 = vpop.permute.xlu0 %3484 }
 0x3b1   : > { %v3506_v18 = vmax.f32 %v3446_v62, %v3485_v17 }
 0x3b2   : > { %3536 = vrot.lane.b32.xlu1 %v3507_v16, %s4850_s19 }
 0x3b3   : > { %3534 = vrot.lane.b32.xlu0 %v3506_v18, %s4850_s19 }
 0x414   : > { %v3521_v19 = vpop.permute.xlu1 %3520 }
 0x415   : > { %v3549_v20 = vmax.f32 %v3499_v0, %v3521_v19  ;;  %v3519_v21 = vpop.permute.xlu0 %3518 }
 0x416   : > { %v3548_v22 = vmax.f32 %v3498_v2, %v3519_v21 }
 0x417   : > { %3560 = vst.msk [vmem:[%s5397_s23 + $0x8] sm:$0xff] %vm3558_vm3, %v3549_v20 }
 0x418   : > { %3559 = vst.msk [vmem:[%s5397_s23] sm:$0xff] %vm3558_vm3, %v3548_v22  ;;  %v3525_v23 = vpop.permute.xlu1 %3524 }
 0x419   : > { %v3551_v24 = vmax.f32 %v3501_v4, %v3525_v23  ;;  %v3523_v25 = vpop.permute.xlu0 %3522 }
 0x41a   : > { %v3550_v26 = vmax.f32 %v3500_v6, %v3523_v25 }
 0x41b   : > { %3562 = vst.msk [vmem:[%s5397_s23 + $0x18] sm:$0xff] %vm3558_vm3, %v3551_v24 }
 0x41c   : > { %3561 = vst.msk [vmem:[%s5397_s23 + $0x10] sm:$0xff] %vm3558_vm3, %v3550_v26  ;;  %v3529_v27 = vpop.permute.xlu1 %3528 }
 0x41d   : > { %v3553_v28 = vmax.f32 %v3503_v8, %v3529_v27  ;;  %v3527_v29 = vpop.permute.xlu0 %3526 }
 0x41e   : > { %v3552_v30 = vmax.f32 %v3502_v10, %v3527_v29 }
 0x41f   : > { %3564 = vst.msk [vmem:[%s5397_s23 + $0x28] sm:$0xff] %vm3558_vm3, %v3553_v28 }
 0x420   : > { %3563 = vst.msk [vmem:[%s5397_s23 + $0x20] sm:$0xff] %vm3558_vm3, %v3552_v30  ;;  %v3533_v31 = vpop.permute.xlu1 %3532 }
 0x421   : > { %v3555_v32 = vmax.f32 %v3505_v12, %v3533_v31  ;;  %v3531_v33 = vpop.permute.xlu0 %3530 }
 0x422   : > { %v3554_v34 = vmax.f32 %v3504_v14, %v3531_v33 }
 0x423   : > { %3566 = vst.msk [vmem:[%s5397_s23 + $0x38] sm:$0xff] %vm3558_vm3, %v3555_v32 }
 0x424   : > { %3565 = vst.msk [vmem:[%s5397_s23 + $0x30] sm:$0xff] %vm3558_vm3, %v3554_v34  ;;  %v3537_v35 = vpop.permute.xlu1 %3536 }
 0x425   : > { %v3557_v36 = vmax.f32 %v3507_v16, %v3537_v35  ;;  %v3535_v37 = vpop.permute.xlu0 %3534 }
 0x426   : > { %v3556_v38 = vmax.f32 %v3506_v18, %v3535_v37 }
 0x427   : > { %3568 = vst.msk [vmem:[%s5397_s23 + $0x48] sm:$0xff] %vm3558_vm3, %v3557_v36 }
 0x428   : > { %3567 = vst.msk [vmem:[%s5397_s23 + $0x40] sm:$0xff] %vm3558_vm3, %v3556_v38 }
 0x429 PF: > { %s19_s24 = sadd.s32 1, %s4842_s24  }
 0x42a   : > { %p16_p3 = scmp.ge.s32.totalorder %s19_s24, 4  }
 0x42c   :  { %18 = sbr.rel (!%p16_p3) target bundleno = 1 (0x1), region = 107 }
 0x433   :  { %3606 = vsyncpa [#allocation4], 1 }
 0x434   :  { %3608 = vsyncpa [#allocation4 + $0x1], 1 }

</bundles_post_ra>
